<compile_context>
chip_gen: v7x
topology: tpu7x:2x2x1
jax: 0.10.0
libtpu: 0.0.40
codegen_flags: <defaults>
</compile_context>

<pallas_src>
import functools

import jax
import jax.numpy as jnp
from jax.experimental import pallas as pl
from jax.experimental.pallas import tpu as pltpu


def _round_up(x, m):
    return (x + m - 1) // m * m


# ----------------------------- Pallas kernel ------------------------------ #

def _conv_bn_silu_kernel(x_ref, w_ref, shift_ref, o_ref, *scratch, ksize, wpa, m_img):
    """Fused stride-1 conv + BN shift + SiLU for one (Cout-tile, image, Cin-tile).

    x_ref:     (1, Lp, tc)      flattened, padded image (bf16)
    w_ref:     (K*K, tc, tn)    BN-scale-folded weights (bf16)
    shift_ref: (1, tn)          folded BN shift (f32)
    o_ref:     (1, m_img, tn)   output tile (bf16)
    scratch:   () when nc == 1, else ((m_img, tn) f32 accumulator,)
    """

    def accumulate(acc):
        # K*K shifted GEMMs as one value chain: single accumulator read/write
        # per grid step (MXU-internal accumulation instead of K*K VMEM RMWs).
        for kh in range(ksize):
            for kw in range(ksize):
                d = kh * wpa + kw                       # static row offset
                a = x_ref[0, pl.ds(d, m_img), :]        # (m_img, tc) bf16
                p = jnp.dot(a, w_ref[kh * ksize + kw],
                            preferred_element_type=jnp.float32)
                acc = p if acc is None else acc + p
        return acc

    def epilogue(acc):
        y = acc + shift_ref[...]                        # BN (scale folded into W)
        o_ref[0] = (y * jax.nn.sigmoid(y)).astype(o_ref.dtype)   # SiLU, bf16 out

    if not scratch:
        # nc == 1: whole contraction in one pass, no scratch traffic at all.
        epilogue(accumulate(None))
    else:
        acc_ref, = scratch
        c = pl.program_id(2)

        @pl.when(c == 0)
        def _init():
            acc_ref[...] = jnp.zeros_like(acc_ref)

        acc_ref[...] = accumulate(acc_ref[...])

        @pl.when(c == pl.num_programs(2) - 1)
        def _finalize():
            epilogue(acc_ref[...])


def _fused_conv(xf, wt, shift, *, ksize, wpa, m_img, tc, tn, vmem_limit):
    """xf: (N, Lp, Cin) bf16, wt: (K*K, Cin, Cout_p) bf16, shift: (1, Cout_p) f32."""
    n, lp, cin = xf.shape
    kk, _, cout_p = wt.shape
    nc = cin // tc
    nj = cout_p // tn

    kernel = functools.partial(_conv_bn_silu_kernel, ksize=ksize, wpa=wpa, m_img=m_img)
    scratch = [] if nc == 1 else [pltpu.VMEM((m_img, tn), jnp.float32)]

    return pl.pallas_call(
        kernel,
        out_shape=jax.ShapeDtypeStruct((n, m_img, cout_p), jnp.bfloat16),
        grid_spec=pltpu.PrefetchScalarGridSpec(
            num_scalar_prefetch=0,
            # Cout tiles outermost: when nc == 1 the weight block index is
            # unchanged across consecutive images, so the weight tile stays
            # resident in VMEM across the whole batch (no N-fold re-DMA).
            grid=(nj, n, nc),
            in_specs=[
                pl.BlockSpec((1, lp, tc), lambda j, i, c: (i, 0, c)),
                pl.BlockSpec((kk, tc, tn), lambda j, i, c: (0, c, j)),
                pl.BlockSpec((1, tn), lambda j, i, c: (0, j)),
            ],
            out_specs=pl.BlockSpec((1, m_img, tn), lambda j, i, c: (i, 0, j)),
            scratch_shapes=scratch,
        ),
        compiler_params=pltpu.CompilerParams(
            dimension_semantics=("parallel", "parallel", "arbitrary"),
            vmem_limit_bytes=int(vmem_limit),
        ),
    )(xf, wt, shift)


# ----------------------------- tile selection ------------------------------ #

def _select_tiles(lp, m_img, kk, cin, cout_p):
    # Contraction tile (cap at 256 to bound per-step VMEM; cin >= 128 is
    # already padded to a multiple of 128 in the wrapper).
    if cin % 128 == 0:
        tc = 256 if cin % 256 == 0 else 128
    else:
        tc = cin                         # cin < 128: full-dim block
    nc = cin // tc

    try:
        vmem_cap = int(pltpu.get_tpu_info().vmem_capacity_bytes)
    except Exception:
        vmem_cap = 64 * 1024 * 1024      # conservative (v7x-sized) fallback
    budget = min(int(0.55 * vmem_cap), 80 * 1024 * 1024)

    def need(tn):
        b = 2 * lp * tc * 2              # x block, double-buffered bf16
        b += 2 * kk * tc * tn * 2        # w block, double-buffered bf16
        b += 2 * m_img * tn * 2          # out block, double-buffered bf16
        b += m_img * tn * 4              # f32 accumulator (scratch or live chain)
        b += 4 * 1024                    # shift + slack
        return b

    # Prefer a single lane-dense Cout tile (nj == 1) so the image tile is
    # streamed from HBM exactly once; fall back to narrower tiles if VMEM-bound.
    tn_cands = [cout_p] + [t for t in (512, 256, 128) if t < cout_p and cout_p % t == 0]
    tn = tn_cands[-1]
    for t in tn_cands:
        if need(t) <= budget:
            tn = t
            break

    vmem_limit = max(need(tn) + (4 << 20), 32 << 20)
    vmem_limit = min(vmem_limit, max(int(0.9 * vmem_cap), 32 << 20))
    return tc, tn, vmem_limit


# ----------------------------- BaseConv wrapper ---------------------------- #

def base_conv_forward(x_nchw, params, *, ksize, stride, eps=1e-5):
    """Equivalent of BaseConv.forward (act='silu', groups=1, bias=False),
    eval-mode BatchNorm (running statistics)."""
    pad = (ksize - 1) // 2
    n, cin, h, w_sp = x_nchw.shape
    cout = params["conv_w"].shape[0]
    hp, wp = h + 2 * pad, w_sp + 2 * pad
    ho = (hp - ksize) // stride + 1
    wo = (wp - ksize) // stride + 1

    # --- input: NCHW -> NHWC (bf16), spatial zero-pad ------------------------
    x = jnp.transpose(x_nchw.astype(jnp.bfloat16), (0, 2, 3, 1))
    x = jnp.pad(x, ((0, 0), (pad, pad), (pad, pad), (0, 0)))

    # --- weights: fold BN scale -> (K, K, Cin, Cout) f32 ---------------------
    scale = params["bn_gamma"] * jax.lax.rsqrt(params["bn_var"] + eps)
    shift = params["bn_beta"] - params["bn_mean"] * scale
    w_khwc = jnp.transpose(params["conv_w"], (2, 3, 1, 0)) * scale

    # --- stride > 1: polyphase / space-to-depth so the kernel is stride-1 ----
    if stride > 1:
        s = stride
        k_eff = -(-ksize // s)                       # ceil(K / s)
        kpad = k_eff * s
        hp_s, wp_s = _round_up(hp, s), _round_up(wp, s)
        x = jnp.pad(x, ((0, 0), (0, hp_s - hp), (0, wp_s - wp), (0, 0)))
        x = x.reshape(n, hp_s // s, s, wp_s // s, s, cin)
        x = jnp.transpose(x, (0, 1, 3, 2, 4, 5)).reshape(
            n, hp_s // s, wp_s // s, s * s * cin)
        w_khwc = jnp.pad(w_khwc, ((0, kpad - ksize), (0, kpad - ksize), (0, 0), (0, 0)))
        w_khwc = w_khwc.reshape(k_eff, s, k_eff, s, cin, cout)
        w_khwc = jnp.transpose(w_khwc, (0, 2, 1, 3, 4, 5)).reshape(
            k_eff, k_eff, s * s * cin, cout)
        hp, wp, cin, ksize = hp_s // s, wp_s // s, s * s * cin, k_eff
    # From here on: stride-1 conv of x (N, hp, wp, cin) with `ksize`; valid
    # output extent is (ho, wo) computed from the original stride.

    # --- lane/sublane-friendly padding ---------------------------------------
    wpa = _round_up(wp, 8)                            # sublane-aligned row width
    if wpa > wp:
        x = jnp.pad(x, ((0, 0), (0, 0), (0, wpa - wp), (0, 0)))
    cin_p = _round_up(cin, 128) if cin >= 128 else cin
    if cin_p > cin:
        x = jnp.pad(x, ((0, 0), (0, 0), (0, 0), (0, cin_p - cin)))
        w_khwc = jnp.pad(w_khwc, ((0, 0), (0, 0), (0, cin_p - cin), (0, 0)))
        cin = cin_p

    # --- flatten spatial; zero rows so every shifted window stays in bounds ---
    m_img = ho * wpa                                  # multiple of 8 (wpa % 8 == 0)
    xf = x.reshape(n, hp * wpa, cin)
    max_read = (m_img - 1) + (ksize - 1) * wpa + (ksize - 1)
    lp = _round_up(max(hp * wpa, max_read + 1), 8)
    if lp > hp * wpa:
        xf = jnp.pad(xf, ((0, 0), (0, lp - hp * wpa), (0, 0)))

    # --- Cout padding (lane-dense), weight/shift packing ----------------------
    cout_p = _round_up(cout, 128)
    kk = ksize * ksize
    tc, tn, vmem_limit = _select_tiles(lp, m_img, kk, cin, cout_p)

    w_khwc = jnp.pad(w_khwc, ((0, 0), (0, 0), (0, 0), (0, cout_p - cout)))
    wt = w_khwc.reshape(kk, cin, cout_p).astype(jnp.bfloat16)
    shift_p = jnp.pad(shift, (0, cout_p - cout)).reshape(1, cout_p).astype(jnp.float32)

    out = _fused_conv(xf, wt, shift_p, ksize=ksize, wpa=wpa, m_img=m_img,
                      tc=tc, tn=tn, vmem_limit=vmem_limit)   # (N, m_img, cout_p) bf16

    # --- drop seam columns / channel padding, back to NCHW f32 ----------------
    out = out.reshape(n, ho, wpa, cout_p)[:, :, :wo, :cout]
    return jnp.transpose(out, (0, 3, 1, 2)).astype(jnp.float32)


# ----------------------------- reference & params -------------------------- #

def _reference_forward(x_nchw, params, *, ksize, stride, eps=1e-5):
    pad = (ksize - 1) // 2
    y = jax.lax.conv_general_dilated(
        x_nchw, params["conv_w"], window_strides=(stride, stride),
        padding=[(pad, pad), (pad, pad)],
        dimension_numbers=("NCHW", "OIHW", "NCHW"))
    scale = params["bn_gamma"] / jnp.sqrt(params["bn_var"] + eps)
    shift = params["bn_beta"] - params["bn_mean"] * scale
    y = y * scale[None, :, None, None] + shift[None, :, None, None]
    return y * jax.nn.sigmoid(y)


def init_params(key, in_channels, out_channels, ksize):
    k_w, k_g, k_b, k_m, k_v = jax.random.split(key, 5)
    return {
        "conv_w": 0.1 * jax.random.normal(
            k_w, (out_channels, in_channels, ksize, ksize), jnp.float32),
        "bn_gamma": 1.0 + 0.1 * jax.random.normal(k_g, (out_channels,), jnp.float32),
        "bn_beta": 0.1 * jax.random.normal(k_b, (out_channels,), jnp.float32),
        "bn_mean": 0.1 * jax.random.normal(k_m, (out_channels,), jnp.float32),
        "bn_var": jnp.abs(1.0 + 0.1 * jax.random.normal(k_v, (out_channels,), jnp.float32)),
    }


def _check(x, params, *, ksize, stride, tol=8e-2):
    fwd = jax.jit(functools.partial(base_conv_forward, ksize=ksize, stride=stride))
    y = fwd(x, params)
    jax.block_until_ready(y)
    n, cin, h, w = x.shape
    cout = params["conv_w"].shape[0]
    pad = (ksize - 1) // 2
    ho = (h + 2 * pad - ksize) // stride + 1
    wo = (w + 2 * pad - ksize) // stride + 1
    assert y.shape == (n, cout, ho, wo), (stride, y.shape)
    y_ref = _reference_forward(x, params, ksize=ksize, stride=stride)
    max_err = float(jnp.max(jnp.abs(y - y_ref)))
    assert max_err < tol, (stride, max_err)


if __name__ == "__main__":
    key = jax.random.PRNGKey(0)
    k_x, k_p, k_x2, k_p2 = jax.random.split(key, 4)

    # Small config: stride-1 and stride-2 (polyphase path).
    N, Cin, H, W = 2, 4, 16, 16
    Cout, ksize = 8, 3
    x = jax.random.normal(k_x, (N, Cin, H, W), jnp.float32)
    params = init_params(k_p, Cin, Cout, ksize)
    _check(x, params, ksize=ksize, stride=1)
    _check(x, params, ksize=ksize, stride=2)

    # Wider-Cin config to exercise the multi-Cin-tile (reduction + scratch) path.
    x2 = jax.random.normal(k_x2, (1, 384, 8, 8), jnp.float32)
    params2 = init_params(k_p2, 384, 8, 3)
    _check(x2, params2, ksize=3, stride=1)

    print("KERNEL_OK")
</pallas_src>

<mosaic_0001>
module attributes {stable_mosaic.version = 11 : i64} {
  func.func @_conv_bn_silu_kernel(%arg0: i32, %arg1: i32, %arg2: i32, %arg3: memref<1x440x4xbf16, #tpu.memory_space<vmem>>, %arg4: memref<9x4x128xbf16, #tpu.memory_space<vmem>>, %arg5: memref<1x128xf32, #tpu.memory_space<vmem>>, %arg6: memref<1x384x128xbf16, #tpu.memory_space<vmem>>) attributes {dimension_semantics = [#tpu.dimension_semantics<parallel>, #tpu.dimension_semantics<parallel>, #tpu.dimension_semantics<arbitrary>], iteration_bounds = array<i64: 1, 2, 1>, scalar_prefetch = 0 : i64, scratch_operands = 0 : i64, tpu.core_type = #tpu.core_type<tc>, window_params = [{transform_indices = @transform_0, window_bounds = array<i64: 1, 440, 4>}, {transform_indices = @transform_1, window_bounds = array<i64: 9, 4, 128>}, {transform_indices = @transform_2, window_bounds = array<i64: 1, 128>}, {transform_indices = @transform_3, window_bounds = array<i64: 1, 384, 128>}]} {
    %c0 = arith.constant 0 : index
    %c0_0 = arith.constant 0 : index
    %c0_1 = arith.constant 0 : index
    %0 = vector.load %arg3[%c0, %c0_0, %c0_1] : memref<1x440x4xbf16, #tpu.memory_space<vmem>>, vector<1x384x4xbf16>
    %1 = vector.shape_cast %0 : vector<1x384x4xbf16> to vector<384x4xbf16>
    %c0_2 = arith.constant 0 : index
    %c0_3 = arith.constant 0 : index
    %c0_4 = arith.constant 0 : index
    %2 = vector.load %arg4[%c0_2, %c0_3, %c0_4] : memref<9x4x128xbf16, #tpu.memory_space<vmem>>, vector<1x4x128xbf16>
    %3 = vector.shape_cast %2 : vector<1x4x128xbf16> to vector<4x128xbf16>
    %cst = arith.constant dense<0.000000e+00> : vector<384x128xf32>
    %4 = tpu.matmul %1, %3, %cst {dimension_numbers = #tpu.dot_dimension_numbers<[1], [0], [0], [1], [0, 0, 1, 1], [], []>} : vector<384x4xbf16>, vector<4x128xbf16>, vector<384x128xf32> -> vector<384x128xf32>
    %c0_5 = arith.constant 0 : index
    %c1 = arith.constant 1 : index
    %c0_6 = arith.constant 0 : index
    %5 = vector.load %arg3[%c0_5, %c1, %c0_6] : memref<1x440x4xbf16, #tpu.memory_space<vmem>>, vector<1x384x4xbf16>
    %6 = vector.shape_cast %5 : vector<1x384x4xbf16> to vector<384x4xbf16>
    %c1_7 = arith.constant 1 : index
    %c0_8 = arith.constant 0 : index
    %c0_9 = arith.constant 0 : index
    %7 = vector.load %arg4[%c1_7, %c0_8, %c0_9] : memref<9x4x128xbf16, #tpu.memory_space<vmem>>, vector<1x4x128xbf16>
    %8 = vector.shape_cast %7 : vector<1x4x128xbf16> to vector<4x128xbf16>
    %cst_10 = arith.constant dense<0.000000e+00> : vector<384x128xf32>
    %9 = tpu.matmul %6, %8, %cst_10 {dimension_numbers = #tpu.dot_dimension_numbers<[1], [0], [0], [1], [0, 0, 1, 1], [], []>} : vector<384x4xbf16>, vector<4x128xbf16>, vector<384x128xf32> -> vector<384x128xf32>
    %10 = arith.addf %4, %9 : vector<384x128xf32>
    %c0_11 = arith.constant 0 : index
    %c2 = arith.constant 2 : index
    %c0_12 = arith.constant 0 : index
    %11 = vector.load %arg3[%c0_11, %c2, %c0_12] : memref<1x440x4xbf16, #tpu.memory_space<vmem>>, vector<1x384x4xbf16>
    %12 = vector.shape_cast %11 : vector<1x384x4xbf16> to vector<384x4xbf16>
    %c2_13 = arith.constant 2 : index
    %c0_14 = arith.constant 0 : index
    %c0_15 = arith.constant 0 : index
    %13 = vector.load %arg4[%c2_13, %c0_14, %c0_15] : memref<9x4x128xbf16, #tpu.memory_space<vmem>>, vector<1x4x128xbf16>
    %14 = vector.shape_cast %13 : vector<1x4x128xbf16> to vector<4x128xbf16>
    %cst_16 = arith.constant dense<0.000000e+00> : vector<384x128xf32>
    %15 = tpu.matmul %12, %14, %cst_16 {dimension_numbers = #tpu.dot_dimension_numbers<[1], [0], [0], [1], [0, 0, 1, 1], [], []>} : vector<384x4xbf16>, vector<4x128xbf16>, vector<384x128xf32> -> vector<384x128xf32>
    %16 = arith.addf %10, %15 : vector<384x128xf32>
    %c0_17 = arith.constant 0 : index
    %c24 = arith.constant 24 : index
    %c0_18 = arith.constant 0 : index
    %17 = vector.load %arg3[%c0_17, %c24, %c0_18] : memref<1x440x4xbf16, #tpu.memory_space<vmem>>, vector<1x384x4xbf16>
    %18 = vector.shape_cast %17 : vector<1x384x4xbf16> to vector<384x4xbf16>
    %c3 = arith.constant 3 : index
    %c0_19 = arith.constant 0 : index
    %c0_20 = arith.constant 0 : index
    %19 = vector.load %arg4[%c3, %c0_19, %c0_20] : memref<9x4x128xbf16, #tpu.memory_space<vmem>>, vector<1x4x128xbf16>
    %20 = vector.shape_cast %19 : vector<1x4x128xbf16> to vector<4x128xbf16>
    %cst_21 = arith.constant dense<0.000000e+00> : vector<384x128xf32>
    %21 = tpu.matmul %18, %20, %cst_21 {dimension_numbers = #tpu.dot_dimension_numbers<[1], [0], [0], [1], [0, 0, 1, 1], [], []>} : vector<384x4xbf16>, vector<4x128xbf16>, vector<384x128xf32> -> vector<384x128xf32>
    %22 = arith.addf %16, %21 : vector<384x128xf32>
    %c0_22 = arith.constant 0 : index
    %c25 = arith.constant 25 : index
    %c0_23 = arith.constant 0 : index
    %23 = vector.load %arg3[%c0_22, %c25, %c0_23] : memref<1x440x4xbf16, #tpu.memory_space<vmem>>, vector<1x384x4xbf16>
    %24 = vector.shape_cast %23 : vector<1x384x4xbf16> to vector<384x4xbf16>
    %c4 = arith.constant 4 : index
    %c0_24 = arith.constant 0 : index
    %c0_25 = arith.constant 0 : index
    %25 = vector.load %arg4[%c4, %c0_24, %c0_25] : memref<9x4x128xbf16, #tpu.memory_space<vmem>>, vector<1x4x128xbf16>
    %26 = vector.shape_cast %25 : vector<1x4x128xbf16> to vector<4x128xbf16>
    %cst_26 = arith.constant dense<0.000000e+00> : vector<384x128xf32>
    %27 = tpu.matmul %24, %26, %cst_26 {dimension_numbers = #tpu.dot_dimension_numbers<[1], [0], [0], [1], [0, 0, 1, 1], [], []>} : vector<384x4xbf16>, vector<4x128xbf16>, vector<384x128xf32> -> vector<384x128xf32>
    %28 = arith.addf %22, %27 : vector<384x128xf32>
    %c0_27 = arith.constant 0 : index
    %c26 = arith.constant 26 : index
    %c0_28 = arith.constant 0 : index
    %29 = vector.load %arg3[%c0_27, %c26, %c0_28] : memref<1x440x4xbf16, #tpu.memory_space<vmem>>, vector<1x384x4xbf16>
    %30 = vector.shape_cast %29 : vector<1x384x4xbf16> to vector<384x4xbf16>
    %c5 = arith.constant 5 : index
    %c0_29 = arith.constant 0 : index
    %c0_30 = arith.constant 0 : index
    %31 = vector.load %arg4[%c5, %c0_29, %c0_30] : memref<9x4x128xbf16, #tpu.memory_space<vmem>>, vector<1x4x128xbf16>
    %32 = vector.shape_cast %31 : vector<1x4x128xbf16> to vector<4x128xbf16>
    %cst_31 = arith.constant dense<0.000000e+00> : vector<384x128xf32>
    %33 = tpu.matmul %30, %32, %cst_31 {dimension_numbers = #tpu.dot_dimension_numbers<[1], [0], [0], [1], [0, 0, 1, 1], [], []>} : vector<384x4xbf16>, vector<4x128xbf16>, vector<384x128xf32> -> vector<384x128xf32>
    %34 = arith.addf %28, %33 : vector<384x128xf32>
    %c0_32 = arith.constant 0 : index
    %c48 = arith.constant 48 : index
    %c0_33 = arith.constant 0 : index
    %35 = vector.load %arg3[%c0_32, %c48, %c0_33] : memref<1x440x4xbf16, #tpu.memory_space<vmem>>, vector<1x384x4xbf16>
    %36 = vector.shape_cast %35 : vector<1x384x4xbf16> to vector<384x4xbf16>
    %c6 = arith.constant 6 : index
    %c0_34 = arith.constant 0 : index
    %c0_35 = arith.constant 0 : index
    %37 = vector.load %arg4[%c6, %c0_34, %c0_35] : memref<9x4x128xbf16, #tpu.memory_space<vmem>>, vector<1x4x128xbf16>
    %38 = vector.shape_cast %37 : vector<1x4x128xbf16> to vector<4x128xbf16>
    %cst_36 = arith.constant dense<0.000000e+00> : vector<384x128xf32>
    %39 = tpu.matmul %36, %38, %cst_36 {dimension_numbers = #tpu.dot_dimension_numbers<[1], [0], [0], [1], [0, 0, 1, 1], [], []>} : vector<384x4xbf16>, vector<4x128xbf16>, vector<384x128xf32> -> vector<384x128xf32>
    %40 = arith.addf %34, %39 : vector<384x128xf32>
    %c0_37 = arith.constant 0 : index
    %c49 = arith.constant 49 : index
    %c0_38 = arith.constant 0 : index
    %41 = vector.load %arg3[%c0_37, %c49, %c0_38] : memref<1x440x4xbf16, #tpu.memory_space<vmem>>, vector<1x384x4xbf16>
    %42 = vector.shape_cast %41 : vector<1x384x4xbf16> to vector<384x4xbf16>
    %c7 = arith.constant 7 : index
    %c0_39 = arith.constant 0 : index
    %c0_40 = arith.constant 0 : index
    %43 = vector.load %arg4[%c7, %c0_39, %c0_40] : memref<9x4x128xbf16, #tpu.memory_space<vmem>>, vector<1x4x128xbf16>
    %44 = vector.shape_cast %43 : vector<1x4x128xbf16> to vector<4x128xbf16>
    %cst_41 = arith.constant dense<0.000000e+00> : vector<384x128xf32>
    %45 = tpu.matmul %42, %44, %cst_41 {dimension_numbers = #tpu.dot_dimension_numbers<[1], [0], [0], [1], [0, 0, 1, 1], [], []>} : vector<384x4xbf16>, vector<4x128xbf16>, vector<384x128xf32> -> vector<384x128xf32>
    %46 = arith.addf %40, %45 : vector<384x128xf32>
    %c0_42 = arith.constant 0 : index
    %c50 = arith.constant 50 : index
    %c0_43 = arith.constant 0 : index
    %47 = vector.load %arg3[%c0_42, %c50, %c0_43] : memref<1x440x4xbf16, #tpu.memory_space<vmem>>, vector<1x384x4xbf16>
    %48 = vector.shape_cast %47 : vector<1x384x4xbf16> to vector<384x4xbf16>
    %c8 = arith.constant 8 : index
    %c0_44 = arith.constant 0 : index
    %c0_45 = arith.constant 0 : index
    %49 = vector.load %arg4[%c8, %c0_44, %c0_45] : memref<9x4x128xbf16, #tpu.memory_space<vmem>>, vector<1x4x128xbf16>
    %50 = vector.shape_cast %49 : vector<1x4x128xbf16> to vector<4x128xbf16>
    %cst_46 = arith.constant dense<0.000000e+00> : vector<384x128xf32>
    %51 = tpu.matmul %48, %50, %cst_46 {dimension_numbers = #tpu.dot_dimension_numbers<[1], [0], [0], [1], [0, 0, 1, 1], [], []>} : vector<384x4xbf16>, vector<4x128xbf16>, vector<384x128xf32> -> vector<384x128xf32>
    %52 = arith.addf %46, %51 : vector<384x128xf32>
    %c0_47 = arith.constant 0 : index
    %c0_48 = arith.constant 0 : index
    %53 = vector.load %arg5[%c0_47, %c0_48] : memref<1x128xf32, #tpu.memory_space<vmem>>, vector<1x128xf32>
    %54 = vector.broadcast %53 : vector<1x128xf32> to vector<384x128xf32>
    %55 = arith.addf %52, %54 : vector<384x128xf32>
    %56 = arith.negf %55 : vector<384x128xf32>
    %57 = math.exp %56 : vector<384x128xf32>
    %cst_49 = arith.constant 1.000000e+00 : f32
    %58 = vector.broadcast %cst_49 : f32 to vector<384x128xf32>
    %59 = arith.addf %58, %57 : vector<384x128xf32>
    %60 = arith.divf %58, %59 : vector<384x128xf32>
    %61 = arith.mulf %55, %60 : vector<384x128xf32>
    %62 = arith.truncf %61 : vector<384x128xf32> to vector<384x128xbf16>
    %c0_50 = arith.constant 0 : index
    %c0_51 = arith.constant 0 : index
    %c0_52 = arith.constant 0 : index
    %63 = vector.load %arg6[%c0_50, %c0_51, %c0_52] : memref<1x384x128xbf16, #tpu.memory_space<vmem>>, vector<1x384x128xbf16>
    %64 = vector.shape_cast %63 : vector<1x384x128xbf16> to vector<384x128xbf16>
    %65 = vector.shape_cast %62 : vector<384x128xbf16> to vector<1x384x128xbf16>
    tpu.vector_store %arg6[%c0_50, %c0_51, %c0_52], %65 {strides = array<i32>} : memref<1x384x128xbf16, #tpu.memory_space<vmem>>, vector<1x384x128xbf16>,
    return
  }
  func.func @transform_0(%arg0: i32, %arg1: i32, %arg2: i32) -> (i32, i32, i32) {
    %c0_i32 = arith.constant 0 : i32
    %c0_i32_0 = arith.constant 0 : i32
    return %arg1, %c0_i32, %arg2 : i32, i32, i32
  }
  func.func @transform_1(%arg0: i32, %arg1: i32, %arg2: i32) -> (i32, i32, i32) {
    %c0_i32 = arith.constant 0 : i32
    %c0_i32_0 = arith.constant 0 : i32
    return %c0_i32, %arg2, %arg0 : i32, i32, i32
  }
  func.func @transform_2(%arg0: i32, %arg1: i32, %arg2: i32) -> (i32, i32) {
    %c0_i32 = arith.constant 0 : i32
    %c0_i32_0 = arith.constant 0 : i32
    return %c0_i32, %arg0 : i32, i32
  }
  func.func @transform_3(%arg0: i32, %arg1: i32, %arg2: i32) -> (i32, i32, i32) {
    %c0_i32 = arith.constant 0 : i32
    %c0_i32_0 = arith.constant 0 : i32
    return %arg1, %c0_i32, %arg0 : i32, i32, i32
  }
}

</mosaic_0001>

<bundles_post_ra>
// kernel: base_conv_forward.1
= control target key start
LH: loop header
LB: loop body
LE: loop exit
PB: predicated region body
PF: predicated region fallthrough
CT: control target
= control target key end

     0   :  { %s7763_s12 = smov 0   ;;  %s7765_s13 = smov 0   ;;  %s9053_s0 = inlined_call_operand.vmem [shape: bf16[2,440,4], index: 0, kind: input, shape index: {}]   ;;  %s9054_s1 = inlined_call_operand.vmem [shape: bf16[9,4,128], index: 1, kind: input, shape index: {}]   ;;  %s9055_s2 = inlined_call_operand.vmem [shape: f32[1,128], index: 2, kind: input, shape index: {}]   ;;  %s9056_s3 = inlined_call_operand.vmem [shape: bf16[2,384,128], index: 3, kind: output, shape index: {}]  }
   0x1   :  { %s7767_s14 = smov 0  }
   0x2 LB: > { %s28_s15 = sadd.s32 1, %s7737_s13  ;;  %p5638_p0 = scmp.ge.s32.totalorder %s7741_s14, 1  ;;  %s7741_s14 = sphi %s7767_s14, %s13_s14   ;;  %s7737_s13 = sphi %s7765_s13, %s9058_s13   ;;  %s7733_s12 = sphi %s7763_s12, %s9057_s12  }
   0x3   : > { %p30_p1 = scmp.ge.s32.totalorder %s28_s15, 2  ;;  %p185_p2 = scmp.lt.s32.totalorder %s7741_s14, 3 }
   0x5   : > { %s9060_s15 = smov (%p30_p1, %s28_s15), 0  ;;  %p186_p3 = pnand %p5638_p0, %p185_p2 }
   0x6   : > { %v5641_v0 = vld [vmem:[%s9054_s1 + $0x2] sm:$0x3] (!%p186_p3)  ;;  %vm697_vm0 = vcmask (!%p186_p3), 1041408   ;;  %v5790_v1 = vld [vmem:[%s9054_s1 + $0x8] sm:$0x3] (!%p186_p3)  ;;  %p225_p4 = scmp.lt.s32.totalorder (!%p186_p3), %s7733_s12, 1 }
   0x7   : > { %189 = sbr.rel (%p186_p3) target bundleno = 710 (0x2c6), region = 32  ;;  %7342 = vmatprep.subr.msk.bf16.mxu1 (!%p186_p3), %vm697_vm0, %v5641_v0  ;;  %7346 = vmatprep.subr.msk.bf16.mxu0 (!%p186_p3), %vm697_vm0, %v5790_v1  ;;  %v699_v2 = vsel (!%p186_p3), %vm697_vm0, %v5641_v0, 0  ;;  %v7791_v3 = vsel (!%p186_p3), %vm697_vm0, %v5790_v1, 0  ;;  %v300_v4 = vld [vmem:[%s9054_s1] sm:$0x3] (!%p186_p3)  ;;  %vm624_vm2 = vcmask (!%p186_p3), 31744  }
   0x8   : > { %6507 = vmatpush3.bf16.msra.mxu1 (!%p186_p3), %v699_v2  ;;  %6707 = vmatpush3.bf16.msra.mxu0 (!%p186_p3), %v7791_v3  ;;  %v5840_v5 = vld [vmem:[%s9054_s1 + $0xa] sm:$0x3] (!%p186_p3)  ;;  %vm427_vm1 = vsmask.f32 (!%p186_p3), 7424  ;;  %v975_v6 = vsel (!%p186_p3), %vm697_vm0, %v300_v4, 0  ;;  %vm1208_vm3 = vcmask (!%p186_p3), 1046528  }
   0x9   : > { %7343 = vmatprep.subr.msk.bf16.mxu1 (!%p186_p3), %vm697_vm0, %v300_v4  ;;  %7348 = vmatprep.subr.msk.bf16.mxu0 (!%p186_p3), %vm697_vm0, %v5840_v5  ;;  %v2970_v12 = vsel (!%p186_p3), %vm697_vm0, %v5840_v5, 0  ;;  %v7846_v39 = vld [vmem:[%s9054_s1 + $0x4] sm:$0x3] (!%p186_p3)  ;;  %v7862_v53 = vld [vmem:[%s9054_s1 + $0xc] sm:$0x3] (!%p186_p3) }
   0xe   : > { %s9062_s12 = smov (!%p225_p4, %s7733_s12), 1 }
   0xf   : > { %s7352_s24 = smul.u32 220, %s9062_s12 }
  0x10   : > { %s7353_s19 = smul.u32 192, %s9062_s12 }
  0x11   : > { %s7808_s27 = scalar_lea.vmem %s9053_s0, %s7352_s24 }
  0x12   : > { %v252_v7 = vld [vmem:[%s7808_s27] sm:$0xf]  ;;  %v253_v8 = vld [vmem:[%s7808_s27 + $0x4] sm:$0xf]  ;;  %v7379_v10 = vld [vmem:[%s7808_s27 + $0x8] sm:$0xff]   ;;  %s8838_s21 = scalar_lea.vmem %s9056_s3, %s7353_s19 }
  0x13   : > { %v7813_v9 = vcombine.low %v252_v7, %v253_v8  ;;  %v2124_v11 = vld [vmem:[%s7808_s27 + $0xc] sm:$0xf]  ;;  %v7819_v13 = vld [vmem:[%s7808_s27 + $0x10] sm:$0xf]  ;;  %v436_v16 = vshll.u32 %v7379_v10, 16  ;;  %v440_v17 = vshrl.u32 %v7379_v10, 16 }
  0x14   : > { %v7824_v18 = vld [vmem:[%s7808_s27 + $0x14] sm:$0xff]   ;;  %v5791_v20 = vcombine.low %v2124_v11, %v7819_v13  ;;  %v7834_v28 = vld [vmem:[%s7808_s27 + $0x1c] sm:$0xff]   ;;  %v7839_v34 = vld [vmem:[%s7808_s27 + $0x24] sm:$0xff]  }
  0x15   : > { %v429_v14 = vshrl.u32 %v7813_v9, 16  ;;  %v431_v15 = vshll.u32 %v7813_v9, 16  ;;  %v7827_v19 = vld [vmem:[%s7808_s27 + $0x10] sm:$0xff]   ;;  %v438_v22 = vrot.slane %v436_v16, 1  ;;  %v2306_v23 = vshll.u32 %v7824_v18, 16  ;;  %v7384_v32 = vld [vmem:[%s7808_s27 + $0x18] sm:$0xff]  }
  0x16   : > { %v2310_v24 = vshrl.u32 %v7824_v18, 16  ;;  %v2299_v25 = vshrl.u32 %v5791_v20, 16  ;;  %v2301_v26 = vshll.u32 %v5791_v20, 16  ;;  %v444_v27 = vshll.u32 %v7827_v19, 16  ;;  %v7853_v48 = vld [vmem:[%s7808_s27 + $0x20] sm:$0xff]   ;;  %v7857_v52 = vld [vmem:[%s7808_s27 + $0x2c] sm:$0xff]  }
  0x17   : > { %v433_v21 = vrot.slane %v431_v15, 1  ;;  %v442_v30 = vor.u32 %v440_v17, %v438_v22  ;;  %v2308_v31 = vrot.slane %v2306_v23, 1  ;;  %v448_v33 = vshrl.u32 %v7827_v19, 16  ;;  %v7868_v58 = vld [vmem:[%s7808_s27 + $0x28] sm:$0xff]   ;;  %v7882_v4 = vld [vmem:[%s7808_s27 + $0x34] sm:$0xff]   ;;  %v7896_v20 = vld [vmem:[%s7808_s27 + $0x3c] sm:$0xff]  }
  0x18   : > { %v2303_v35 = vrot.slane %v2301_v26, 1  ;;  %v446_v36 = vrot.slane %v444_v27, 1  ;;  %v2314_v37 = vshll.u32 %v7834_v28, 16  ;;  %v2318_v38 = vshrl.u32 %v7834_v28, 16  ;;  %v7887_v8 = vld [vmem:[%s7808_s27 + $0x30] sm:$0xff]  }
  0x19   : > { %v434_v29 = vor.u32 %v433_v21, %v429_v14  ;;  %v2312_v41 = vor.u32 %v2310_v24, %v2308_v31  ;;  %v452_v42 = vshll.u32 %v7384_v32, 16  ;;  %v2322_v43 = vshll.u32 %v7839_v34, 16 }
  0x1a   : > { %v2304_v44 = vor.u32 %v2303_v35, %v2299_v25  ;;  %v447_v45 = vsel %vm427_vm1, %v442_v30, %v446_v36  ;;  %v2316_v46 = vrot.slane %v2314_v37, 1  ;;  %v450_v47 = vor.u32 %v448_v33, %v446_v36  ;;  %v7915_v36 = vld [vmem:[%s7808_s27 + $0x40] sm:$0xff]  }
  0x1b   : > { %v439_v40 = vsel %vm427_vm1, %v434_v29, %v438_v22  ;;  %v454_v49 = vrot.slane %v452_v42, 1  ;;  %v2324_v50 = vrot.slane %v2322_v43, 1  ;;  %v456_v51 = vshrl.u32 %v7384_v32, 16  ;;  %v7900_v22 = vld [vmem:[%s7808_s27 + $0x38] sm:$0xff]   ;;  %v7920_v42 = vld [vmem:[%s7808_s27 + $0x4c] sm:$0xff]  }
  0x1c   : > { %6508 = vmatprep.mubr.msk.bf16.mxu1 %vm624_vm2, %v439_v40  ;;  %v2309_v54 = vsel %vm427_vm1, %v2304_v44, %v2308_v31  ;;  %v2317_v55 = vsel %vm427_vm1, %v2312_v41, %v2316_v46  ;;  %v2320_v56 = vor.u32 %v2318_v38, %v2316_v46  ;;  %v460_v57 = vshll.u32 %v7853_v48, 16  ;;  %v7909_v31 = vld [vmem:[%s7808_s27 + $0x44] sm:$0xff]  }
  0x1d   : > { %6509 = vmatmul.mubr.msk.bf16.vlgmr.msra.gmra.mrb[0].mxu1 %vm624_vm2, %v447_v45  ;;  %6708 = vmatprep.mubr.msk.bf16.mxu0 %vm624_vm2, %v2309_v54  ;;  %v455_v59 = vsel %vm427_vm1, %v450_v47, %v454_v49  ;;  %v458_v60 = vor.u32 %v456_v51, %v454_v49  ;;  %v2326_v61 = vshrl.u32 %v7839_v34, 16  ;;  %v2330_v62 = vshll.u32 %v7857_v52, 16  ;;  %v7923_v43 = vld [vmem:[%s7808_s27 + $0x48] sm:$0xff]   ;;  %v7930_v51 = vld [vmem:[%s7808_s27 + $0x54] sm:$0xff]  }
  0x1e   : > { %6557 = vmatpush3.bf16.msra.mxu1 %v975_v6  ;;  %6709 = vmatmul.mubr.msk.bf16.vlgmr.msra.gmra.mrb[0].mxu0 %vm624_vm2, %v2317_v55  ;;  %v2325_v63 = vsel %vm427_vm1, %v2320_v56, %v2324_v50  ;;  %v462_v0 = vrot.slane %v460_v57, 1  ;;  %v464_v1 = vshrl.u32 %v7853_v48, 16  ;;  %v468_v2 = vshll.u32 %v7868_v58, 16 }
  0x1f   : > { %7344 = vmatprep.subr.msk.bf16.mxu1 %vm697_vm0, %v7846_v39  ;;  %6512 = vmatprep.mubr.msk.bf16.mxu1 %vm624_vm2, %v455_v59  ;;  %v2328_v5 = vor.u32 %v2326_v61, %v2324_v50  ;;  %v2332_v6 = vrot.slane %v2330_v62, 1  ;;  %v2334_v7 = vshrl.u32 %v7857_v52, 16  ;;  %v472_v10 = vshrl.u32 %v7868_v58, 16  ;;  %v7940_v62 = vld [vmem:[%s7808_s27 + $0x50] sm:$0xff]  }
  0x20   : > { %6757 = vmatpush3.bf16.msra.mxu0 %v2970_v12  ;;  %6712 = vmatprep.mubr.msk.bf16.mxu0 %vm624_vm2, %v2325_v63  ;;  %v463_v11 = vsel %vm427_vm1, %v458_v60, %v462_v0  ;;  %v466_v14 = vor.u32 %v464_v1, %v462_v0  ;;  %v470_v15 = vrot.slane %v468_v2, 1  ;;  %v2338_v16 = vshll.u32 %v7882_v4, 16 }
  0x21   : > { %7349 = vmatprep.subr.msk.bf16.mxu0 %vm697_vm0, %v7862_v53  ;;  %v2336_v12 = vor.u32 %v2334_v7, %v2332_v6  ;;  %v476_v17 = vshll.u32 %v7887_v8, 16  ;;  %v2342_v21 = vshrl.u32 %v7882_v4, 16  ;;  %v480_v25 = vshrl.u32 %v7887_v8, 16  ;;  %v7947_v7 = vld [vmem:[%s7808_s27 + $0x58] sm:$0xff]  }
  0x22   : > { %v471_v23 = vsel %vm427_vm1, %v466_v14, %v470_v15  ;;  %v2340_v24 = vrot.slane %v2338_v16, 1  ;;  %v2333_v26 = vsel %vm427_vm1, %v2328_v5, %v2332_v6  ;;  %v2346_v29 = vshll.u32 %v7896_v20, 16 }
  0x23   : > { %v478_v27 = vrot.slane %v476_v17, 1  ;;  %v484_v30 = vshll.u32 %v7900_v22, 16  ;;  %v474_v33 = vor.u32 %v472_v10, %v470_v15  ;;  %v2350_v35 = vshrl.u32 %v7896_v20, 16 }
  0x24   : > { %v2341_v32 = vsel %vm427_vm1, %v2336_v12, %v2340_v24  ;;  %v2348_v40 = vrot.slane %v2346_v29, 1  ;;  %v2354_v41 = vshll.u32 %v7909_v31, 16  ;;  %v2344_v44 = vor.u32 %v2342_v21, %v2340_v24 }
  0x25   : > { %6513 = vmatmul.mubr.msk.bf16.gmra.mrb[4].mxu1 %vm624_vm2, %v463_v11  ;;  %v482_v37 = vor.u32 %v480_v25, %v478_v27  ;;  %v486_v38 = vrot.slane %v484_v30, 1  ;;  %v492_v45 = vshll.u32 %v7915_v36, 16  ;;  %v479_v46 = vsel %vm427_vm1, %v474_v33, %v478_v27  ;;  %v7951_v11 = vld [vmem:[%s7808_s27 + $0x5c] sm:$0xff]  }
  0x26   : > { %6516 = vmatprep.mubr.msk.bf16.mxu1 %vm624_vm2, %v471_v23  ;;  %6713 = vmatmul.mubr.msk.bf16.gmra.mrb[4].mxu0 %vm624_vm2, %v2333_v26  ;;  %v2352_v47 = vor.u32 %v2350_v35, %v2348_v40  ;;  %v2356_v49 = vrot.slane %v2354_v41, 1  ;;  %v488_v50 = vshrl.u32 %v7900_v22, 16  ;;  %v496_v55 = vshrl.u32 %v7915_v36, 16  ;;  %v7958_v23 = vld [vmem:[%s7808_s27 + $0x64] sm:$0xff]  }
  0x27   : > { %6716 = vmatprep.mubr.msk.bf16.mxu0 %vm624_vm2, %v2341_v32  ;;  %v487_v54 = vsel %vm427_vm1, %v482_v37, %v486_v38  ;;  %v500_v56 = vshll.u32 %v7923_v43, 16  ;;  %v2362_v57 = vshll.u32 %v7920_v42, 16  ;;  %v2349_v59 = vsel %vm427_vm1, %v2344_v44, %v2348_v40  ;;  %v7968_v33 = vld [vmem:[%s7808_s27 + $0x60] sm:$0xff]  }
  0x28   : > { %v494_v60 = vrot.slane %v492_v45, 1  ;;  %v2358_v61 = vshrl.u32 %v7909_v31, 16  ;;  %v2357_v63 = vsel %vm427_vm1, %v2352_v47, %v2356_v49  ;;  %v490_v0 = vor.u32 %v488_v50, %v486_v38  ;;  %v7975_v45 = vld [vmem:[%s7808_s27 + $0x68] sm:$0xff]  }
  0x29   : > { %v2366_v1 = vshrl.u32 %v7920_v42, 16  ;;  %v2370_v2 = vshll.u32 %v7930_v51, 16  ;;  %v502_v6 = vrot.slane %v500_v56, 1  ;;  %v2364_v10 = vrot.slane %v2362_v57, 1  ;;  %v7981_v50 = vld [vmem:[%s7808_s27 + $0x6c] sm:$0xff]  }
  0x2a   : > { %v498_v5 = vor.u32 %v496_v55, %v494_v60  ;;  %v2360_v14 = vor.u32 %v2358_v61, %v2356_v49  ;;  %v508_v15 = vshll.u32 %v7940_v62, 16  ;;  %v495_v16 = vsel %vm427_vm1, %v490_v0, %v494_v60 }
  0x2b   : > { %v2368_v12 = vor.u32 %v2366_v1, %v2364_v10  ;;  %v2372_v17 = vrot.slane %v2370_v2, 1  ;;  %v504_v21 = vshrl.u32 %v7923_v43, 16  ;;  %v512_v25 = vshrl.u32 %v7940_v62, 16 }
  0x2c   : > { %v503_v24 = vsel %vm427_vm1, %v498_v5, %v502_v6  ;;  %v516_v26 = vshll.u32 %v7947_v7, 16  ;;  %v2378_v27 = vshll.u32 %v7951_v11, 16  ;;  %v2365_v29 = vsel %vm427_vm1, %v2360_v14, %v2364_v10 }
  0x2d   : > { %6517 = vmatmul.mubr.msk.bf16.gmra.mrb[8].mxu1 %vm624_vm2, %v479_v46  ;;  %v510_v30 = vrot.slane %v508_v15, 1  ;;  %v2374_v32 = vshrl.u32 %v7930_v51, 16  ;;  %v2373_v35 = vsel %vm427_vm1, %v2368_v12, %v2372_v17  ;;  %v506_v37 = vor.u32 %v504_v21, %v502_v6  ;;  %v7994_v6 = vld [vmem:[%s7808_s27 + $0x70] sm:$0xff]  }
  0x2e   : > { %6520 = vmatprep.mubr.msk.bf16.mxu1 %vm624_vm2, %v487_v54  ;;  %6717 = vmatmul.mubr.msk.bf16.gmra.mrb[8].mxu0 %vm624_vm2, %v2349_v59  ;;  %v2382_v38 = vshrl.u32 %v7951_v11, 16  ;;  %v2386_v40 = vshll.u32 %v7958_v23, 16  ;;  %v518_v44 = vrot.slane %v516_v26, 1  ;;  %v2380_v46 = vrot.slane %v2378_v27, 1 }
  0x2f   : > { %6720 = vmatprep.mubr.msk.bf16.mxu0 %vm624_vm2, %v2357_v63  ;;  %v514_v41 = vor.u32 %v512_v25, %v510_v30  ;;  %v2376_v47 = vor.u32 %v2374_v32, %v2372_v17  ;;  %v524_v49 = vshll.u32 %v7968_v33, 16  ;;  %v511_v54 = vsel %vm427_vm1, %v506_v37, %v510_v30  ;;  %v2842_v63 = vld [vmem:[%s7808_s27 + $0xc] sm:$0xe]  ;;  %v8000_v17 = vld [vmem:[%s7808_s27 + $0x78] sm:$0xff]  }
  0x30   : > { %v2384_v55 = vor.u32 %v2382_v38, %v2380_v46  ;;  %v2388_v56 = vrot.slane %v2386_v40, 1  ;;  %v520_v57 = vshrl.u32 %v7947_v7, 16  ;;  %v528_v60 = vshrl.u32 %v7968_v33, 16  ;;  %v8017_v40 = vld [vmem:[%s7808_s27 + $0x80] sm:$0xff]  }
  0x31   : > { %v519_v59 = vsel %vm427_vm1, %v514_v41, %v518_v44  ;;  %v532_v61 = vshll.u32 %v7975_v45, 16  ;;  %v2381_v0 = vsel %vm427_vm1, %v2376_v47, %v2380_v46  ;;  %v526_v1 = vrot.slane %v524_v49, 1  ;;  %v8022_v47 = vld [vmem:[%s7808_s27 + $0x88] sm:$0xff]  }
  0x32   : > { %v2390_v2 = vshrl.u32 %v7958_v23, 16  ;;  %v2394_v5 = vshll.u32 %v7981_v50, 16  ;;  %v2389_v10 = vsel %vm427_vm1, %v2384_v55, %v2388_v56  ;;  %v522_v14 = vor.u32 %v520_v57, %v518_v44 }
  0x33   : > { %v5841_v15 = vcombine.low %v2842_v63, %v7819_v13  ;;  %v534_v12 = vrot.slane %v532_v61, 1  ;;  %v540_v25 = vshll.u32 %v7994_v6, 16  ;;  %v2849_v13 = vrot.slane %v7824_v18, 1  ;;  %v8035_v63 = vld [vmem:[%s7808_s27 + $0x90] sm:$0xff]  }
  0x34   : > { %v2392_v21 = vor.u32 %v2390_v2, %v2388_v56  ;;  %v527_v26 = vsel %vm427_vm1, %v522_v14, %v526_v1  ;;  %v544_v32 = vshrl.u32 %v7994_v6, 16  ;;  %v2851_v49 = vrot.slane %v7834_v28, 1 }
  0x35   : > { %6521 = vmatmul.mubr.msk.bf16.gmra.mrb[12].mxu1 %vm624_vm2, %v495_v16  ;;  %v530_v16 = vor.u32 %v528_v60, %v526_v1  ;;  %v2848_v27 = vrot.slane %v5841_v15, 1  ;;  %v542_v38 = vrot.slane %v540_v25, 1  ;;  %v556_v55 = vshll.u32 %v8017_v40, 16  ;;  %v8045_v15 = vld [vmem:[%s7808_s27 + $0x98] sm:$0xff]  }
  0x36   : > { %6524 = vmatprep.mubr.msk.bf16.mxu1 %vm624_vm2, %v503_v24  ;;  %6721 = vmatmul.mubr.msk.bf16.gmra.mrb[12].mxu0 %vm624_vm2, %v2365_v29  ;;  %v8004_v24 = vrot.slane %v2394_v5, 1  ;;  %v536_v29 = vshrl.u32 %v7975_v45, 16  ;;  %v552_v57 = vshrl.u32 %v8000_v17, 16  ;;  %v564_v61 = vshll.u32 %v8022_v47, 16 }
  0x37   : > { %6724 = vmatprep.mubr.msk.bf16.mxu0 %vm624_vm2, %v2373_v35  ;;  %v535_v30 = vsel %vm427_vm1, %v530_v16, %v534_v12  ;;  %v548_v35 = vshll.u32 %v8000_v17, 16  ;;  %v2850_v18 = vsel %vm1208_vm3, %v2848_v27, %v2849_v13  ;;  %v546_v44 = vor.u32 %v544_v32, %v542_v38 }
  0x38   : > { %v2397_v37 = vsel %vm427_vm1, %v2392_v21, %v8004_v24  ;;  %v538_v41 = vor.u32 %v536_v29, %v534_v12  ;;  %v2852_v28 = vsel %vm1208_vm3, %v2849_v13, %v2851_v49  ;;  %v572_v14 = vshll.u32 %v8035_v63, 16  ;;  %v8059_v13 = vld [vmem:[%s9054_s1 + $0xe] sm:$0x3] }
  0x39   : > { %v550_v46 = vrot.slane %v548_v35, 1  ;;  %v2857_v12 = vrot.slane %v7882_v4, 1  ;;  %v568_v21 = vshrl.u32 %v8022_v47, 16  ;;  %v580_v27 = vshll.u32 %v8045_v15, 16 }
  0x3a   : > { %v543_v56 = vsel %vm427_vm1, %v538_v41, %v542_v38  ;;  %v574_v29 = vrot.slane %v572_v14, 1  ;;  %v8071_v38 = vld [vmem:[%s7808_s27 + $0xa8] sm:$0xff]  }
  0x3b   : > { %v551_v60 = vsel %vm427_vm1, %v546_v44, %v550_v46  ;;  %v554_v2 = vor.u32 %v552_v57, %v550_v46  ;;  %v2861_v46 = vrot.slane %v7909_v31, 1  ;;  %v8084_v57 = vld [vmem:[%s7808_s27 + $0xb0] sm:$0xff]   ;;  %v600_v14 = vshrl.u32 %v8071_v38, 16 }
  0x3d   : > { %6525 = vmatmul.mubr.msk.bf16.gmra.mrb[16].mxu1 %vm624_vm2, %v511_v54  ;;  %v2853_v54 = vrot.slane %v7839_v34, 1  ;;  %v3488_v34 = vsel %vm697_vm0, %v7862_v53, 0  ;;  %v2855_v53 = vrot.slane %v7857_v52, 1  ;;  %v8062_v52 = vld [vmem:[%s7808_s27 + $0xa0] sm:$0xff]  }
  0x3e   : > { %6528 = vmatprep.mubr.msk.bf16.mxu1 %vm624_vm2, %v519_v59  ;;  %6725 = vmatmul.mubr.msk.bf16.gmra.mrb[16].mxu0 %vm624_vm2, %v2381_v0  ;;  %v560_v59 = vshrl.u32 %v8017_v40, 16  ;;  %v558_v0 = vrot.slane %v556_v55, 1  ;;  %v588_v41 = vshll.u32 %v8062_v52, 16  ;;  %v592_v55 = vshrl.u32 %v8062_v52, 16 }
  0x3f   : > { %6728 = vmatprep.mubr.msk.bf16.mxu0 %vm624_vm2, %v2389_v10  ;;  %v2854_v1 = vsel %vm1208_vm3, %v2851_v49, %v2853_v54  ;;  %v566_v10 = vrot.slane %v564_v61, 1  ;;  %v2856_v4 = vsel %vm1208_vm3, %v2853_v54, %v2855_v53  ;;  %v584_v49 = vshrl.u32 %v8045_v15, 16 }
  0x40   : > { %v562_v5 = vor.u32 %v560_v59, %v558_v0  ;;  %v559_v16 = vsel %vm427_vm1, %v554_v2, %v558_v0  ;;  %v590_v59 = vrot.slane %v588_v41, 1  ;;  %v2863_v0 = vrot.slane %v7920_v42, 1 }
  0x41   : > { %v570_v32 = vor.u32 %v568_v21, %v566_v10  ;;  %v604_v2 = vshll.u32 %v8084_v57, 16 }
  0x42   : > { %v567_v25 = vsel %vm427_vm1, %v562_v5, %v566_v10  ;;  %v2864_v42 = vsel %vm1208_vm3, %v2861_v46, %v2863_v0 }
  0x43   : > { %v575_v44 = vsel %vm427_vm1, %v570_v32, %v574_v29  ;;  %v606_v21 = vrot.slane %v604_v2, 1 }
  0x45   : > { %6529 = vmatmul.mubr.msk.bf16.gmra.mrb[20].mxu1 %vm624_vm2, %v527_v26  ;;  %v576_v26 = vshrl.u32 %v8035_v63, 16 }
  0x46   : > { %6532 = vmatprep.mubr.msk.bf16.mxu1 %vm624_vm2, %v535_v30  ;;  %6729 = vmatmul.mubr.msk.bf16.gmra.mrb[20].mxu0 %vm624_vm2, %v2397_v37  ;;  %v2858_v30 = vsel %vm1208_vm3, %v2855_v53, %v2857_v12  ;;  %v582_v37 = vrot.slane %v580_v27, 1  ;;  %v608_v53 = vshrl.u32 %v8084_v57, 16 }
  0x47   : > { %6758 = vmatprep.mubr.msk.bf16.mxu0 %vm624_vm2, %v2850_v18  ;;  %v578_v35 = vor.u32 %v576_v26, %v574_v29  ;;  %v2859_v18 = vrot.slane %v7896_v20, 1  ;;  %v2867_v29 = vrot.slane %v7951_v11, 1  ;;  %v7417_v11 = vld [vmem:[%s7808_s27 + $0x74] sm:$0xff]  }
  0x48   : > { %v586_v61 = vor.u32 %v584_v49, %v582_v37  ;;  %v610_v27 = vor.u32 %v608_v53, %v606_v21  ;;  %v2873_v49 = vrot.slane %v7417_v11, 1  ;;  %v8168_v53 = vld [vmem:[%s7808_s27 + $0xa4] sm:$0xff]  }
  0x49   : > { %v583_v54 = vsel %vm427_vm1, %v578_v35, %v582_v37  ;;  %v2860_v20 = vsel %vm1208_vm3, %v2857_v12, %v2859_v18  ;;  %v2862_v31 = vsel %vm1208_vm3, %v2859_v18, %v2861_v46  ;;  %v8104_v12 = vld [vmem:[%s7808_s27 + $0xc0] ss:$0 sps:$4 sm:$0x11]   ;;  %v2871_v46 = vrot.slane %v7981_v50, 1  ;;  %v7431_v11 = vld [vmem:[%s7808_s27 + $0x28] sm:$0xff]  }
  0x4a   : > { %v591_v10 = vsel %vm427_vm1, %v586_v61, %v590_v59  ;;  %v620_v32 = vshll.u32 %v8104_v12, 16  ;;  %v1331_v50 = vsel %vm697_vm0, %v7846_v39, 0 }
  0x4c   : > { %v622_v41 = vrot.slane %v620_v32, 1 }
  0x4d   : > { %6533 = vmatmul.mubr.msk.bf16.gmra.mrb[24].mxu1 %vm624_vm2, %v543_v56  ;;  %v596_v56 = vshll.u32 %v8071_v38, 16 }
  0x4e   : > { %6536 = vmatprep.mubr.msk.bf16.mxu1 %vm624_vm2, %v551_v60  ;;  %6759 = vmatmul.mubr.msk.bf16.vlgmr.msra.gmra.mrb[0].mxu0 %vm624_vm2, %v2852_v28  ;;  %v8089_v60 = vld [vmem:[%s7808_s27 + $0xb8] sm:$0xff]   ;;  %v594_v28 = vor.u32 %v592_v55, %v590_v59  ;;  %v2874_v59 = vsel %vm1208_vm3, %v2871_v46, %v2873_v49 }
  0x4f   : > { %6807 = vmatpush3.bf16.msra.mxu0 %v3488_v34  ;;  %6762 = vmatprep.mubr.msk.bf16.mxu0 %vm624_vm2, %v2854_v1  ;;  %v598_v34 = vrot.slane %v596_v56, 1  ;;  %v2865_v1 = vrot.slane %v7930_v51, 1  ;;  %v612_v5 = vshll.u32 %v8089_v60, 16  ;;  %v7418_v55 = vld [vmem:[%s7808_s27 + $0x7c] sm:$0xff]  }
  0x50   : > { %7350 = vmatprep.subr.msk.bf16.mxu0 %vm697_vm0, %v8059_v13 }
  0x51   : > { %v614_v51 = vrot.slane %v612_v5, 1  ;;  %v602_v26 = vor.u32 %v600_v14, %v598_v34  ;;  %v2868_v18 = vsel %vm1208_vm3, %v2865_v1, %v2867_v29  ;;  %v8165_v14 = vld [vmem:[%s7808_s27 + $0x9c] sm:$0xff]  }
  0x53   : > { %v607_v35 = vsel %vm427_vm1, %v602_v26, %v606_v21  ;;  %v615_v37 = vsel %vm427_vm1, %v610_v27, %v614_v51  ;;  %v2885_v21 = vrot.slane %v8168_v53, 1 }
  0x55   : > { %6537 = vmatmul.mubr.msk.bf16.gmra.mrb[28].mxu1 %vm624_vm2, %v559_v16  ;;  %v599_v16 = vsel %vm427_vm1, %v594_v28, %v598_v34  ;;  %v8141_v28 = vld [vmem:[%s9054_s1 + $0x6] sm:$0x3]  ;;  %v7420_v34 = vld [vmem:[%s7808_s27 + $0x8c] sm:$0xff]  }
  0x56   : > { %6540 = vmatprep.mubr.msk.bf16.mxu1 %vm624_vm2, %v567_v25  ;;  %6763 = vmatmul.mubr.msk.bf16.gmra.mrb[4].mxu0 %vm624_vm2, %v2856_v4  ;;  %v2866_v25 = vsel %vm1208_vm3, %v2863_v0, %v2865_v1  ;;  %v2869_v4 = vrot.slane %v7958_v23, 1  ;;  %v7421_v0 = vld [vmem:[%s7808_s27 + $0x94] sm:$0xff]   ;;  %v2879_v2 = vrot.slane %v7420_v34, 1 }
  0x57   : > { %6766 = vmatprep.mubr.msk.bf16.mxu0 %vm624_vm2, %v2858_v30  ;;  %v616_v30 = vshrl.u32 %v8089_v60, 16  ;;  %v2881_v5 = vrot.slane %v7421_v0, 1  ;;  %v7442_v0 = vld [vmem:[%s7808_s27 + $0x78] sm:$0xff]  }
  0x58   : > { %v2870_v23 = vsel %vm1208_vm3, %v2867_v29, %v2869_v4  ;;  %v2872_v56 = vsel %vm1208_vm3, %v2869_v4, %v2871_v46  ;;  %v8197_v4 = vld [vmem:[%s7808_s27 + $0xbc] sm:$0xff]   ;;  %v7435_v46 = vld [vmem:[%s7808_s27 + $0x48] sm:$0xff]  }
  0x59   : > { %v2891_v32 = vrot.slane %v8197_v4, 1 }
  0x5d   : > { %6541 = vmatmul.mubr.msk.bf16.gmra.mrb[32].mxu1 %vm624_vm2, %v575_v44  ;;  %v618_v44 = vor.u32 %v616_v30, %v614_v51  ;;  %v8178_v51 = vld [vmem:[%s7808_s27 + $0xac] sm:$0xff]   ;;  %v8203_v30 = vld [vmem:[%s7808_s27 + $0xc4] sm:$0xff]  }
  0x5e   : > { %6544 = vmatprep.mubr.msk.bf16.mxu1 %vm624_vm2, %v583_v54  ;;  %6767 = vmatmul.mubr.msk.bf16.gmra.mrb[8].mxu0 %vm624_vm2, %v2860_v20  ;;  %v7419_v20 = vld [vmem:[%s7808_s27 + $0x84] sm:$0xff]   ;;  %v2887_v27 = vrot.slane %v8178_v51, 1 }
  0x5f   : > { %6770 = vmatprep.mubr.msk.bf16.mxu0 %vm624_vm2, %v2862_v31  ;;  %v623_v54 = vsel %vm427_vm1, %v618_v44, %v622_v41  ;;  %v2875_v31 = vrot.slane %v7418_v55, 1  ;;  %v2877_v61 = vrot.slane %v7419_v20, 1  ;;  %v7429_v41 = vld [vmem:[%s7808_s27 + $0x18] sm:$0xff]   ;;  %v7434_v44 = vld [vmem:[%s7808_s27 + $0x40] sm:$0xff]  }
  0x60   : > { %v1202_v55 = vld [vmem:[%s7808_s27] sm:$0xe] }
  0x61   : > { %v2876_v39 = vsel %vm1208_vm3, %v2873_v49, %v2875_v31  ;;  %v2878_v1 = vsel %vm1208_vm3, %v2875_v31, %v2877_v61  ;;  %v7436_v49 = vld [vmem:[%s7808_s27 + $0x50] sm:$0xff]  }
  0x65   : > { %6545 = vmatmul.mubr.msk.bf16.gmra.mrb[36].mxu1 %vm624_vm2, %v591_v10  ;;  %v8159_v10 = vld [vmem:[%s7808_s27 + $0x18] sm:$0xff]  }
  0x66   : > { %6548 = vmatprep.mubr.msk.bf16.mxu1 %vm624_vm2, %v599_v16  ;;  %6771 = vmatmul.mubr.msk.bf16.gmra.mrb[12].mxu0 %vm624_vm2, %v2864_v42  ;;  %v2882_v16 = vsel %vm1208_vm3, %v2879_v2, %v2881_v5  ;;  %v2883_v42 = vrot.slane %v8165_v14, 1 }
  0x67   : > { %6774 = vmatprep.mubr.msk.bf16.mxu0 %vm624_vm2, %v2866_v25 }
  0x68   : > { %v2884_v25 = vsel %vm1208_vm3, %v2881_v5, %v2883_v42  ;;  %v2886_v26 = vsel %vm1208_vm3, %v2883_v42, %v2885_v21  ;;  %v7443_v42 = vld [vmem:[%s7808_s27 + $0x80] sm:$0xff]  }
  0x6d   : > { %6549 = vmatmul.mubr.msk.bf16.gmra.mrb[40].mxu1 %vm624_vm2, %v607_v35  ;;  %v8213_v35 = vld [vmem:[%s7808_s27 + $0xcc] ss:$0 sps:$4 sm:$0x11]  }
  0x6e   : > { %6552 = vmatprep.mubr.msk.bf16.mxu1 %vm624_vm2, %v615_v37  ;;  %6775 = vmatmul.mubr.msk.bf16.gmra.mrb[16].mxu0 %vm624_vm2, %v2868_v18  ;;  %v2895_v18 = vrot.slane %v8213_v35, 1 }
  0x6f   : > { %6778 = vmatprep.mubr.msk.bf16.mxu0 %vm624_vm2, %v2870_v23  ;;  %v7432_v23 = vld [vmem:[%s7808_s27 + $0x30] sm:$0xff]  }
  0x75   : > { %6553 = vmatmul.mubr.msk.bf16.gmra.mrb[44].mxu1 %vm624_vm2, %v623_v54  ;;  %v7437_v54 = vld [vmem:[%s7808_s27 + $0x58] sm:$0xff]  }
  0x76   : > { %6558 = vmatprep.mubr.msk.bf16.mxu1 %vm624_vm2, %v7813_v9  ;;  %6779 = vmatmul.mubr.msk.bf16.gmra.mrb[20].mxu0 %vm624_vm2, %v2872_v56  ;;  %v8145_v9 = vld [vmem:[%s7808_s27 + $0x8] sm:$0xff]   ;;  %v7698_v56 = vld [vmem:[%s7808_s27 + $0x4] sm:$0xf] }
  0x77   : > { %6782 = vmatprep.mubr.msk.bf16.mxu0 %vm624_vm2, %v2874_v59  ;;  %v5716_v20 = vcombine.low %v1202_v55, %v7698_v56  ;;  %v7438_v59 = vld [vmem:[%s7808_s27 + $0x60] sm:$0xff]   ;;  %v8331_v55 = vld [vmem:[%s7808_s27 + $0x1c] sm:$0xf]  ;;  %v7449_v56 = vld [vmem:[%s7808_s27 + $0xb0] sm:$0xff]  }
  0x79   : > { %v1209_v31 = vrot.slane %v5716_v20, 1  ;;  %v7450_v20 = vld [vmem:[%s7808_s27 + $0xb8] sm:$0xff]  }
  0x7d   : > { %6559 = vmatmul.mubr.msk.bf16.vlgmr.msra.gmra.mrb[0].mxu1 %vm624_vm2, %v8145_v9 }
  0x7e   : > { %6607 = vmatpush3.bf16.msra.mxu1 %v1331_v50  ;;  %6562 = vmatprep.mubr.msk.bf16.mxu1 %vm624_vm2, %v7827_v19  ;;  %v2880_v19 = vsel %vm1208_vm3, %v2877_v61, %v2879_v2  ;;  %v7439_v50 = vld [vmem:[%s7808_s27 + $0x68] sm:$0xff]   ;;  %v1210_v61 = vrot.slane %v8145_v9, 1  ;;  %v1214_v9 = vrot.slane %v8159_v10, 1 }
  0x7f   : > { %7345 = vmatprep.subr.msk.bf16.mxu1 %vm697_vm0, %v8141_v28  ;;  %6783 = vmatmul.mubr.msk.bf16.gmra.mrb[24].mxu0 %vm624_vm2, %v2876_v39  ;;  %v7440_v39 = vld [vmem:[%s7808_s27 + $0x70] sm:$0xff]  }
  0x80   : > { %6786 = vmatprep.mubr.msk.bf16.mxu0 %vm624_vm2, %v2878_v1  ;;  %v1211_v34 = vsel %vm1208_vm3, %v1209_v31, %v1210_v61  ;;  %v7699_v1 = vld [vmem:[%s7808_s27 + $0x10] sm:$0xff]  }
  0x81   : > { %v1212_v2 = vrot.slane %v7699_v1, 1 }
  0x83   : > { %v1213_v5 = vsel %vm1208_vm3, %v1210_v61, %v1212_v2  ;;  %v7708_v61 = vld [vmem:[%s7808_s27 + $0x58] sm:$0xff]  }
  0x85   : > { %6563 = vmatmul.mubr.msk.bf16.gmra.mrb[4].mxu1 %vm624_vm2, %v8159_v10  ;;  %v7700_v10 = vld [vmem:[%s7808_s27 + $0x20] sm:$0xff]  }
  0x86   : > { %6566 = vmatprep.mubr.msk.bf16.mxu1 %vm624_vm2, %v7853_v48  ;;  %v8184_v48 = vld [vmem:[%s7808_s27 + $0xb4] sm:$0xff]  }
  0x87   : > { %6787 = vmatmul.mubr.msk.bf16.gmra.mrb[28].mxu0 %vm624_vm2, %v2880_v19  ;;  %v2889_v29 = vrot.slane %v8184_v48, 1  ;;  %v1849_v19 = vsel %vm697_vm0, %v8141_v28, 0  ;;  %v7702_v28 = vld [vmem:[%s9054_s1 + $0x8] sm:$0x3] }
  0x88   : > { %6790 = vmatprep.mubr.msk.bf16.mxu0 %vm624_vm2, %v2882_v16  ;;  %v1215_v16 = vsel %vm1208_vm3, %v1212_v2, %v1214_v9 }
  0x8d   : > { %6567 = vmatmul.mubr.msk.bf16.gmra.mrb[8].mxu1 %vm624_vm2, %v7868_v58  ;;  %v2888_v58 = vsel %vm1208_vm3, %v2885_v21, %v2887_v27  ;;  %v7444_v21 = vld [vmem:[%s7808_s27 + $0x88] sm:$0xff]  }
  0x8e   : > { %6570 = vmatprep.mubr.msk.bf16.mxu1 %vm624_vm2, %v7887_v8  ;;  %v2890_v8 = vsel %vm1208_vm3, %v2887_v27, %v2889_v29 }
  0x8f   : > { %6791 = vmatmul.mubr.msk.bf16.gmra.mrb[32].mxu0 %vm624_vm2, %v2884_v25  ;;  %v1216_v25 = vrot.slane %v7700_v10, 1 }
  0x90   : > { %6794 = vmatprep.mubr.msk.bf16.mxu0 %vm624_vm2, %v2886_v26  ;;  %v7701_v26 = vld [vmem:[%s7808_s27 + $0x28] sm:$0xff]  }
  0x91   : > { %v1218_v27 = vrot.slane %v7701_v26, 1  ;;  %v8356_v26 = vld [vmem:[%s7808_s27 + $0x28] sm:$0xff]  }
  0x95   : > { %6571 = vmatmul.mubr.msk.bf16.gmra.mrb[12].mxu1 %vm624_vm2, %v7900_v22  ;;  %v2893_v22 = vrot.slane %v8203_v30, 1 }
  0x96   : > { %6574 = vmatprep.mubr.msk.bf16.mxu1 %vm624_vm2, %v7915_v36  ;;  %v2892_v36 = vsel %vm1208_vm3, %v2889_v29, %v2891_v32  ;;  %v1217_v29 = vsel %vm1208_vm3, %v1214_v9, %v1216_v25  ;;  %v7451_v9 = vld [vmem:[%s7808_s27 + $0xc0] sm:$0xff]  }
  0x97   : > { %6795 = vmatmul.mubr.msk.bf16.gmra.mrb[36].mxu0 %vm624_vm2, %v2888_v58  ;;  %v2894_v37 = vsel %vm1208_vm3, %v2891_v32, %v2893_v22  ;;  %v1219_v58 = vsel %vm1208_vm3, %v1216_v25, %v1218_v27  ;;  %v7446_v32 = vld [vmem:[%s7808_s27 + $0x98] sm:$0xff]   ;;  %v1234_v25 = vrot.slane %v7975_v45, 1 }
  0x98   : > { %6798 = vmatprep.mubr.msk.bf16.mxu0 %vm624_vm2, %v2890_v8  ;;  %v7445_v8 = vld [vmem:[%s7808_s27 + $0x90] sm:$0xff]  }
  0x9d   : > { %6575 = vmatmul.mubr.msk.bf16.gmra.mrb[16].mxu1 %vm624_vm2, %v7923_v43  ;;  %v2896_v43 = vsel %vm1208_vm3, %v2893_v22, %v2895_v18  ;;  %v7703_v22 = vld [vmem:[%s7808_s27 + $0x30] sm:$0xff]  }
  0x9e   : > { %6578 = vmatprep.mubr.msk.bf16.mxu1 %vm624_vm2, %v7940_v62  ;;  %v7430_v62 = vld [vmem:[%s7808_s27 + $0x20] sm:$0xff]  }
  0x9f   : > { %6799 = vmatmul.mubr.msk.bf16.gmra.mrb[40].mxu0 %vm624_vm2, %v2892_v36  ;;  %v1220_v36 = vrot.slane %v7703_v22, 1  ;;  %v3953_v22 = vshll.u32 %v8356_v26, 16 }
  0xa0   : > { %6802 = vmatprep.mubr.msk.bf16.mxu0 %vm624_vm2, %v2894_v37  ;;  %v7704_v37 = vld [vmem:[%s7808_s27 + $0x38] sm:$0xff]  }
  0xa1   : > { %v1222_v18 = vrot.slane %v7704_v37, 1  ;;  %v1236_v37 = vrot.slane %v7994_v6, 1 }
  0xa5   : > { %6579 = vmatmul.mubr.msk.bf16.gmra.mrb[20].mxu1 %vm624_vm2, %v7947_v7  ;;  %v4206_v7 = vsel %vm697_vm0, %v8059_v13, 0  ;;  %v7433_v13 = vld [vmem:[%s7808_s27 + $0x38] sm:$0xff]  }
  0xa6   : > { %6582 = vmatprep.mubr.msk.bf16.mxu1 %vm624_vm2, %v7968_v33  ;;  %v8240_v33 = vld [vmem:[%s9054_s1 + $0x10] sm:$0x3] }
  0xa7   : > { %6803 = vmatmul.mubr.msk.bf16.gmra.mrb[44].mxu0 %vm624_vm2, %v2896_v43  ;;  %v1221_v43 = vsel %vm1208_vm3, %v1218_v27, %v1220_v36 }
  0xa8   : > { %6808 = vmatprep.mubr.msk.bf16.mxu0 %vm624_vm2, %v7429_v41  ;;  %v1223_v41 = vsel %vm1208_vm3, %v1220_v36, %v1222_v18 }
  0xad   : > { %6583 = vmatmul.mubr.msk.bf16.gmra.mrb[24].mxu1 %vm624_vm2, %v7975_v45 }
  0xae   : > { %6586 = vmatprep.mubr.msk.bf16.mxu1 %vm624_vm2, %v7994_v6  ;;  %v8381_v6 = vld [vmem:[%s7808_s27 + $0x40] sm:$0xff]  }
  0xaf   : > { %6809 = vmatmul.mubr.msk.bf16.vlgmr.msra.gmra.mrb[0].mxu0 %vm624_vm2, %v7430_v62  ;;  %v7447_v62 = vld [vmem:[%s7808_s27 + $0xa0] sm:$0xff]  }
  0xb0   : > { %6857 = vmatpush3.bf16.msra.mxu0 %v4206_v7  ;;  %6812 = vmatprep.mubr.msk.bf16.mxu0 %vm624_vm2, %v7431_v11  ;;  %v7448_v11 = vld [vmem:[%s7808_s27 + $0xa8] sm:$0xff]   ;;  %v7705_v7 = vld [vmem:[%s7808_s27 + $0x40] sm:$0xff]  }
  0xb1   : > { %7351 = vmatprep.subr.msk.bf16.mxu0 %vm697_vm0, %v8240_v33 }
  0xb5   : > { %6587 = vmatmul.mubr.msk.bf16.gmra.mrb[28].mxu1 %vm624_vm2, %v8000_v17 }
  0xb6   : > { %6590 = vmatprep.mubr.msk.bf16.mxu1 %vm624_vm2, %v8017_v40 }
  0xb7   : > { %6813 = vmatmul.mubr.msk.bf16.gmra.mrb[4].mxu0 %vm624_vm2, %v7432_v23  ;;  %v1224_v23 = vrot.slane %v7705_v7, 1 }
  0xb8   : > { %6816 = vmatprep.mubr.msk.bf16.mxu0 %vm624_vm2, %v7433_v13  ;;  %v7706_v13 = vld [vmem:[%s7808_s27 + $0x48] sm:$0xff]  }
  0xbd   : > { %6591 = vmatmul.mubr.msk.bf16.gmra.mrb[32].mxu1 %vm624_vm2, %v8022_v47 }
  0xbe   : > { %6594 = vmatprep.mubr.msk.bf16.mxu1 %vm624_vm2, %v8035_v63 }
  0xbf   : > { %6817 = vmatmul.mubr.msk.bf16.gmra.mrb[8].mxu0 %vm624_vm2, %v7434_v44  ;;  %v1226_v44 = vrot.slane %v7706_v13, 1 }
  0xc0   : > { %6820 = vmatprep.mubr.msk.bf16.mxu0 %vm624_vm2, %v7435_v46  ;;  %v1225_v46 = vsel %vm1208_vm3, %v1222_v18, %v1224_v23  ;;  %v3957_v18 = vshrl.u32 %v8356_v26, 16 }
  0xc5   : > { %6595 = vmatmul.mubr.msk.bf16.gmra.mrb[36].mxu1 %vm624_vm2, %v8045_v15 }
  0xc6   : > { %6598 = vmatprep.mubr.msk.bf16.mxu1 %vm624_vm2, %v8062_v52 }
  0xc7   : > { %6821 = vmatmul.mubr.msk.bf16.gmra.mrb[12].mxu0 %vm624_vm2, %v7436_v49  ;;  %v1227_v49 = vsel %vm1208_vm3, %v1224_v23, %v1226_v44  ;;  %v1237_v23 = vsel %vm1208_vm3, %v1234_v25, %v1236_v37 }
  0xc8   : > { %6824 = vmatprep.mubr.msk.bf16.mxu0 %vm624_vm2, %v7437_v54  ;;  %v3763_v54 = vld [vmem:[%s7808_s27 + $0x18] sm:$0xf] }
  0xc9   : > { %v5916_v31 = vcombine.low %v3763_v54, %v8331_v55  ;;  %v4609_v54 = vsel %vm697_vm0, %v8240_v33, 0 }
  0xcb   : > { %v3940_v1 = vshll.u32 %v5916_v31, 16 }
  0xcd   : > { %6599 = vmatmul.mubr.msk.bf16.gmra.mrb[40].mxu1 %vm624_vm2, %v8071_v38 }
  0xce   : > { %6602 = vmatprep.mubr.msk.bf16.mxu1 %vm624_vm2, %v8084_v57 }
  0xcf   : > { %6825 = vmatmul.mubr.msk.bf16.gmra.mrb[16].mxu0 %vm624_vm2, %v7438_v59  ;;  %v7707_v59 = vld [vmem:[%s7808_s27 + $0x50] sm:$0xff]  }
  0xd0   : > { %6828 = vmatprep.mubr.msk.bf16.mxu0 %vm624_vm2, %v7439_v50  ;;  %v1228_v50 = vrot.slane %v7707_v59, 1  ;;  %v1240_v59 = vrot.slane %v8017_v40, 1 }
  0xd5   : > { %6603 = vmatmul.mubr.msk.bf16.gmra.mrb[44].mxu1 %vm624_vm2, %v8089_v60 }
  0xd6   : > { %6608 = vmatprep.mubr.msk.bf16.mxu1 %vm624_vm2, %v1211_v34  ;;  %v1230_v34 = vrot.slane %v7708_v61, 1  ;;  %v1242_v61 = vrot.slane %v8022_v47, 1 }
  0xd7   : > { %6829 = vmatmul.mubr.msk.bf16.gmra.mrb[20].mxu0 %vm624_vm2, %v7440_v39  ;;  %v1229_v39 = vsel %vm1208_vm3, %v1226_v44, %v1228_v50 }
  0xd8   : > { %6832 = vmatprep.mubr.msk.bf16.mxu0 %vm624_vm2, %v7442_v0  ;;  %v8344_v0 = vld [vmem:[%s7808_s27 + $0x20] sm:$0xff]   ;;  %v1231_v2 = vsel %vm1208_vm3, %v1228_v50, %v1230_v34 }
  0xd9   : > { %v3945_v10 = vshll.u32 %v8344_v0, 16  ;;  %v3949_v45 = vshrl.u32 %v8344_v0, 16 }
  0xdd   : > { %6609 = vmatmul.mubr.msk.bf16.vlgmr.msra.gmra.mrb[0].mxu1 %vm624_vm2, %v1213_v5  ;;  %v7452_v5 = vld [vmem:[%s7808_s27 + $0xc8] sm:$0xff]  }
  0xde   : > { %6657 = vmatpush3.bf16.msra.mxu1 %v1849_v19  ;;  %6612 = vmatprep.mubr.msk.bf16.mxu1 %vm624_vm2, %v1215_v16  ;;  %v7709_v19 = vld [vmem:[%s7808_s27 + $0x60] sm:$0xff]  }
  0xdf   : > { %7347 = vmatprep.subr.msk.bf16.mxu1 %vm697_vm0, %v7702_v28  ;;  %6833 = vmatmul.mubr.msk.bf16.gmra.mrb[24].mxu0 %vm624_vm2, %v7443_v42  ;;  %v1232_v16 = vrot.slane %v7709_v19, 1  ;;  %v3938_v42 = vshrl.u32 %v5916_v31, 16  ;;  %v3977_v31 = vshll.u32 %v8381_v6, 16 }
  0xe0   : > { %6836 = vmatprep.mubr.msk.bf16.mxu0 %vm624_vm2, %v7444_v21  ;;  %v3942_v21 = vrot.slane %v3940_v1, 1 }
  0xe1   : > { %v1233_v27 = vsel %vm1208_vm3, %v1230_v34, %v1232_v16  ;;  %v3979_v40 = vrot.slane %v3977_v31, 1  ;;  %v1252_v31 = vrot.slane %v8084_v57, 1  ;;  %v8463_v57 = vld [vmem:[%s7808_s27 + $0x80] sm:$0xff]  }
  0xe2   : > { %v3943_v28 = vor.u32 %v3942_v21, %v3938_v42  ;;  %v1244_v21 = vrot.slane %v8035_v63, 1  ;;  %v8423_v63 = vld [vmem:[%s7808_s27 + $0x60] sm:$0xff]  }
  0xe5   : > { %6613 = vmatmul.mubr.msk.bf16.gmra.mrb[4].mxu1 %vm624_vm2, %v1217_v29  ;;  %v3947_v29 = vrot.slane %v3945_v10, 1 }
  0xe6   : > { %6616 = vmatprep.mubr.msk.bf16.mxu1 %vm624_vm2, %v1219_v58  ;;  %v8361_v58 = vld [vmem:[%s7808_s27 + $0x30] sm:$0xff]  }
  0xe7   : > { %6837 = vmatmul.mubr.msk.bf16.gmra.mrb[28].mxu0 %vm624_vm2, %v7445_v8  ;;  %v1235_v8 = vsel %vm1208_vm3, %v1232_v16, %v1234_v25  ;;  %v3948_v36 = vsel %vm427_vm1, %v3943_v28, %v3947_v29  ;;  %v3951_v7 = vor.u32 %v3949_v45, %v3947_v29  ;;  %v3981_v16 = vshrl.u32 %v8381_v6, 16  ;;  %v8418_v29 = vld [vmem:[%s7808_s27 + $0x58] sm:$0xff]  }
  0xe8   : > { %6840 = vmatprep.mubr.msk.bf16.mxu0 %vm624_vm2, %v7446_v32  ;;  %v7453_v32 = vld [vmem:[%s7808_s27 + $0xd0] sm:$0xff]  }
  0xed   : > { %6617 = vmatmul.mubr.msk.bf16.gmra.mrb[8].mxu1 %vm624_vm2, %v1221_v43  ;;  %v3961_v43 = vshll.u32 %v8361_v58, 16 }
  0xee   : > { %6620 = vmatprep.mubr.msk.bf16.mxu1 %vm624_vm2, %v1223_v41  ;;  %v1238_v41 = vrot.slane %v8000_v17, 1 }
  0xef   : > { %6841 = vmatmul.mubr.msk.bf16.gmra.mrb[32].mxu0 %vm624_vm2, %v7447_v62  ;;  %v3955_v62 = vrot.slane %v3953_v22, 1  ;;  %v3963_v44 = vrot.slane %v3961_v43, 1 }
  0xf0   : > { %6844 = vmatprep.mubr.msk.bf16.mxu0 %vm624_vm2, %v7448_v11  ;;  %v8376_v11 = vld [vmem:[%s7808_s27 + $0x38] sm:$0xff]   ;;  %v1241_v1 = vsel %vm1208_vm3, %v1238_v41, %v1240_v59 }
  0xf1   : > { %v3959_v13 = vor.u32 %v3957_v18, %v3955_v62  ;;  %v3956_v17 = vsel %vm427_vm1, %v3951_v7, %v3955_v62  ;;  %v3973_v50 = vshrl.u32 %v8376_v11, 16  ;;  %v4005_v62 = vshrl.u32 %v8418_v29, 16 }
  0xf2   : > { %v4009_v7 = vshll.u32 %v8423_v63, 16 }
  0xf5   : > { %6621 = vmatmul.mubr.msk.bf16.gmra.mrb[12].mxu1 %vm624_vm2, %v1225_v46  ;;  %v1239_v46 = vsel %vm1208_vm3, %v1236_v37, %v1238_v41  ;;  %v4001_v37 = vshll.u32 %v8418_v29, 16  ;;  %v1248_v41 = vrot.slane %v8062_v52, 1  ;;  %v8443_v52 = vld [vmem:[%s7808_s27 + $0x70] sm:$0xff]  }
  0xf6   : > { %6624 = vmatprep.mubr.msk.bf16.mxu1 %vm624_vm2, %v1227_v49  ;;  %v3969_v49 = vshll.u32 %v8376_v11, 16 }
  0xf7   : > { %6845 = vmatmul.mubr.msk.bf16.gmra.mrb[36].mxu0 %vm624_vm2, %v7449_v56  ;;  %v3965_v56 = vshrl.u32 %v8361_v58, 16 }
  0xf8   : > { %6848 = vmatprep.mubr.msk.bf16.mxu0 %vm624_vm2, %v7450_v20  ;;  %v3964_v20 = vsel %vm427_vm1, %v3959_v13, %v3963_v44  ;;  %v3971_v34 = vrot.slane %v3969_v49, 1  ;;  %v4003_v13 = vrot.slane %v4001_v37, 1 }
  0xf9   : > { %v3967_v33 = vor.u32 %v3965_v56, %v3963_v44  ;;  %v8438_v44 = vld [vmem:[%s7808_s27 + $0x68] sm:$0xff]  }
  0xfb   : > { %v3972_v19 = vsel %vm427_vm1, %v3967_v33, %v3971_v34  ;;  %v1254_v33 = vrot.slane %v8089_v60, 1 }
  0xfd   : > { %6625 = vmatmul.mubr.msk.bf16.gmra.mrb[16].mxu1 %vm624_vm2, %v1229_v39  ;;  %v8398_v39 = vld [vmem:[%s7808_s27 + $0x48] sm:$0xff]  }
  0xfe   : > { %6628 = vmatprep.mubr.msk.bf16.mxu1 %vm624_vm2, %v1231_v2  ;;  %v3975_v2 = vor.u32 %v3973_v50, %v3971_v34  ;;  %v3985_v47 = vshll.u32 %v8398_v39, 16  ;;  %v3989_v10 = vshrl.u32 %v8398_v39, 16  ;;  %v4025_v34 = vshll.u32 %v8443_v52, 16 }
  0xff   : > { %6849 = vmatmul.mubr.msk.bf16.gmra.mrb[40].mxu0 %vm624_vm2, %v7451_v9  ;;  %v8403_v9 = vld [vmem:[%s7808_s27 + $0x50] sm:$0xff]  }
 0x100   : > { %6852 = vmatprep.mubr.msk.bf16.mxu0 %vm624_vm2, %v7452_v5  ;;  %v1243_v5 = vsel %vm1208_vm3, %v1240_v59, %v1242_v61  ;;  %v3980_v42 = vsel %vm427_vm1, %v3975_v2, %v3979_v40  ;;  %v3993_v25 = vshll.u32 %v8403_v9, 16  ;;  %v3987_v28 = vrot.slane %v3985_v47, 1  ;;  %v8458_v2 = vld [vmem:[%s7808_s27 + $0x78] sm:$0xff]  }
 0x101   : > { %v3997_v18 = vshrl.u32 %v8403_v9, 16  ;;  %v4013_v59 = vshrl.u32 %v8423_v63, 16  ;;  %v4033_v60 = vshll.u32 %v8458_v2, 16 }
 0x102   : > { %v3991_v22 = vor.u32 %v3989_v10, %v3987_v28  ;;  %v3995_v45 = vrot.slane %v3993_v25, 1  ;;  %v1256_v25 = vrot.slane %v8104_v12, 1  ;;  %v8483_v12 = vld [vmem:[%s7808_s27 + $0x90] sm:$0xff]  }
 0x104   : > { %v3996_v43 = vsel %vm427_vm1, %v3991_v22, %v3995_v45 }
 0x105   : > { %6629 = vmatmul.mubr.msk.bf16.gmra.mrb[20].mxu1 %vm624_vm2, %v1233_v27  ;;  %v1246_v27 = vrot.slane %v8045_v15, 1 }
 0x106   : > { %6632 = vmatprep.mubr.msk.bf16.mxu1 %vm624_vm2, %v1235_v8  ;;  %v3983_v8 = vor.u32 %v3981_v16, %v3979_v40  ;;  %v1255_v16 = vsel %vm1208_vm3, %v1252_v31, %v1254_v33 }
 0x107   : > { %6853 = vmatmul.mubr.msk.bf16.gmra.mrb[44].mxu0 %vm624_vm2, %v7453_v32  ;;  %v1245_v32 = vsel %vm1208_vm3, %v1242_v61, %v1244_v21  ;;  %v1249_v49 = vsel %vm1208_vm3, %v1246_v27, %v1248_v41  ;;  %v4021_v61 = vshrl.u32 %v8438_v44, 16 }
 0x108   : > { %6858 = vmatprep.mubr.msk.bf16.mxu0 %vm624_vm2, %v3948_v36  ;;  %v1247_v36 = vsel %vm1208_vm3, %v1244_v21, %v1246_v27  ;;  %v3988_v15 = vsel %vm427_vm1, %v3983_v8, %v3987_v28  ;;  %v4029_v21 = vshrl.u32 %v8443_v52, 16  ;;  %v4037_v27 = vshrl.u32 %v8458_v2, 16 }
 0x109   : > { %v4041_v28 = vshll.u32 %v8463_v57, 16  ;;  %v4035_v8 = vrot.slane %v4033_v60, 1  ;;  %v8520_v60 = vld [vmem:[%s7808_s27 + $0xb0] sm:$0xff]  }
 0x10b   : > { %v4039_v37 = vor.u32 %v4037_v27, %v4035_v8 }
 0x10d   : > { %6633 = vmatmul.mubr.msk.bf16.gmra.mrb[24].mxu1 %vm624_vm2, %v1237_v23  ;;  %v1250_v23 = vrot.slane %v8071_v38, 1 }
 0x10e   : > { %6636 = vmatprep.mubr.msk.bf16.mxu1 %vm624_vm2, %v1239_v46  ;;  %v3999_v46 = vor.u32 %v3997_v18, %v3995_v45  ;;  %v1257_v45 = vsel %vm1208_vm3, %v1254_v33, %v1256_v25 }
 0x10f   : > { %6859 = vmatmul.mubr.msk.bf16.vlgmr.msra.gmra.mrb[0].mxu0 %vm624_vm2, %v3956_v17  ;;  %v4007_v17 = vor.u32 %v4005_v62, %v4003_v13  ;;  %v1251_v56 = vsel %vm1208_vm3, %v1248_v41, %v1250_v23  ;;  %v4045_v41 = vshrl.u32 %v8463_v57, 16 }
 0x110   : > { %6907 = vmatpush3.bf16.msra.mxu0 %v4609_v54  ;;  %6862 = vmatprep.mubr.msk.bf16.mxu0 %vm624_vm2, %v3964_v20  ;;  %v4011_v54 = vrot.slane %v4009_v7, 1  ;;  %v4017_v20 = vshll.u32 %v8438_v44, 16  ;;  %v4004_v38 = vsel %vm427_vm1, %v3999_v46, %v4003_v13  ;;  %v8495_v46 = vld [vmem:[%s7808_s27 + $0x98] sm:$0xff]  }
 0x112   : > { %v4012_v50 = vsel %vm427_vm1, %v4007_v17, %v4011_v54  ;;  %v4015_v40 = vor.u32 %v4013_v59, %v4011_v54  ;;  %v7471_v54 = vld [vmem:[%s7808_s27 + $0x1c] sm:$0xff]   ;;  %v4065_v59 = vshll.u32 %v8495_v46, 16 }
 0x115   : > { %6637 = vmatmul.mubr.msk.bf16.gmra.mrb[28].mxu1 %vm624_vm2, %v1241_v1  ;;  %v4019_v1 = vrot.slane %v4017_v20, 1 }
 0x116   : > { %6640 = vmatprep.mubr.msk.bf16.mxu1 %vm624_vm2, %v1243_v5  ;;  %v1253_v5 = vsel %vm1208_vm3, %v1250_v23, %v1252_v31  ;;  %v4057_v23 = vshll.u32 %v8483_v12, 16  ;;  %v4061_v31 = vshrl.u32 %v8483_v12, 16 }
 0x117   : > { %6863 = vmatmul.mubr.msk.bf16.gmra.mrb[4].mxu0 %vm624_vm2, %v3972_v19  ;;  %v4023_v47 = vor.u32 %v4021_v61, %v4019_v1  ;;  %v4027_v19 = vrot.slane %v4025_v34, 1  ;;  %v4069_v34 = vshrl.u32 %v8495_v46, 16 }
 0x118   : > { %6866 = vmatprep.mubr.msk.bf16.mxu0 %vm624_vm2, %v3980_v42  ;;  %v4020_v42 = vsel %vm427_vm1, %v4015_v40, %v4019_v1  ;;  %v4059_v20 = vrot.slane %v4057_v23, 1  ;;  %v4067_v1 = vrot.slane %v4065_v59, 1  ;;  %v8514_v40 = vld [vmem:[%s7808_s27 + $0xa8] sm:$0xff]  }
 0x119   : > { %v4028_v10 = vsel %vm427_vm1, %v4023_v47, %v4027_v19  ;;  %v4031_v22 = vor.u32 %v4029_v21, %v4027_v19  ;;  %v7475_v19 = vld [vmem:[%s7808_s27 + $0x2c] sm:$0xff]   ;;  %v4085_v27 = vshrl.u32 %v8514_v40, 16 }
 0x11a   : > { %v4063_v47 = vor.u32 %v4061_v31, %v4059_v20  ;;  %v7483_v59 = vld [vmem:[%s7808_s27 + $0x4c] sm:$0xff]  }
 0x11c   : > { %v4068_v21 = vsel %vm427_vm1, %v4063_v47, %v4067_v1 }
 0x11d   : > { %6641 = vmatmul.mubr.msk.bf16.gmra.mrb[32].mxu1 %vm624_vm2, %v1245_v32  ;;  %v8477_v32 = vld [vmem:[%s7808_s27 + $0x88] sm:$0xff]  }
 0x11e   : > { %6644 = vmatprep.mubr.msk.bf16.mxu1 %vm624_vm2, %v1247_v36  ;;  %v7467_v36 = vld [vmem:[%s7808_s27 + $0xc] sm:$0xff]   ;;  %v4049_v18 = vshll.u32 %v8477_v32, 16  ;;  %v4053_v7 = vshrl.u32 %v8477_v32, 16 }
 0x11f   : > { %6867 = vmatmul.mubr.msk.bf16.gmra.mrb[8].mxu0 %vm624_vm2, %v3988_v15  ;;  %v4043_v15 = vrot.slane %v4041_v28, 1  ;;  %v4089_v28 = vshll.u32 %v8520_v60, 16 }
 0x120   : > { %6870 = vmatprep.mubr.msk.bf16.mxu0 %vm624_vm2, %v3996_v43  ;;  %v4036_v43 = vsel %vm427_vm1, %v4031_v22, %v4035_v8  ;;  %v4051_v13 = vrot.slane %v4049_v18, 1  ;;  %v8532_v22 = vld [vmem:[%s7808_s27 + $0xb8] sm:$0xff]  }
 0x121   : > { %v4044_v62 = vsel %vm427_vm1, %v4039_v37, %v4043_v15  ;;  %v4047_v17 = vor.u32 %v4045_v41, %v4043_v15  ;;  %v7479_v37 = vld [vmem:[%s7808_s27 + $0x3c] sm:$0xff]   ;;  %v4091_v18 = vrot.slane %v4089_v28, 1  ;;  %v4097_v41 = vshll.u32 %v8532_v22, 16  ;;  %v4481_v28 = vld [vmem:[%s7808_s27 + $0x18] sm:$0xe] }
 0x125   : > { %6645 = vmatmul.mubr.msk.bf16.gmra.mrb[36].mxu1 %vm624_vm2, %v1249_v49  ;;  %v7469_v49 = vld [vmem:[%s7808_s27 + $0x14] sm:$0xff]  }
 0x126   : > { %6648 = vmatprep.mubr.msk.bf16.mxu1 %vm624_vm2, %v1251_v56  ;;  %v4055_v56 = vor.u32 %v4053_v7, %v4051_v13  ;;  %v4093_v7 = vshrl.u32 %v8520_v60, 16 }
 0x127   : > { %6871 = vmatmul.mubr.msk.bf16.gmra.mrb[12].mxu0 %vm624_vm2, %v4004_v38  ;;  %v8501_v38 = vld [vmem:[%s7808_s27 + $0xa0] sm:$0xff]  }
 0x128   : > { %6874 = vmatprep.mubr.msk.bf16.mxu0 %vm624_vm2, %v4012_v50  ;;  %v4052_v50 = vsel %vm427_vm1, %v4047_v17, %v4051_v13  ;;  %v4060_v61 = vsel %vm427_vm1, %v4055_v56, %v4059_v20  ;;  %v4073_v33 = vshll.u32 %v8501_v38, 16  ;;  %v4101_v13 = vshrl.u32 %v8532_v22, 16  ;;  %v7481_v56 = vld [vmem:[%s7808_s27 + $0x44] sm:$0xff]  }
 0x129   : > { %v4099_v17 = vrot.slane %v4097_v41, 1  ;;  %v4095_v20 = vor.u32 %v4093_v7, %v4091_v18  ;;  %v7491_v7 = vld [vmem:[%s7808_s27 + $0x6c] sm:$0xff]  }
 0x12d   : > { %6649 = vmatmul.mubr.msk.bf16.gmra.mrb[40].mxu1 %vm624_vm2, %v1253_v5  ;;  %v7473_v5 = vld [vmem:[%s7808_s27 + $0x24] sm:$0xff]  }
 0x12e   : > { %6652 = vmatprep.mubr.msk.bf16.mxu1 %vm624_vm2, %v1255_v16  ;;  %v4075_v16 = vrot.slane %v4073_v33, 1  ;;  %v4100_v33 = vsel %vm427_vm1, %v4095_v20, %v4099_v17  ;;  %v7494_v20 = vld [vmem:[%s7808_s27 + $0x7c] sm:$0xff]  }
 0x12f   : > { %6875 = vmatmul.mubr.msk.bf16.gmra.mrb[16].mxu0 %vm624_vm2, %v4020_v42  ;;  %v4081_v42 = vshll.u32 %v8514_v40, 16 }
 0x130   : > { %6878 = vmatprep.mubr.msk.bf16.mxu0 %vm624_vm2, %v4028_v10  ;;  %v4077_v10 = vshrl.u32 %v8501_v38, 16 }
 0x131   : > { %v4083_v8 = vrot.slane %v4081_v42, 1 }
 0x133   : > { %v4087_v15 = vor.u32 %v4085_v27, %v4083_v8 }
 0x135   : > { %6653 = vmatmul.mubr.msk.bf16.gmra.mrb[44].mxu1 %vm624_vm2, %v1257_v45  ;;  %v7477_v45 = vld [vmem:[%s7808_s27 + $0x34] sm:$0xff]   ;;  %v4092_v23 = vsel %vm427_vm1, %v4087_v15, %v4091_v18  ;;  %v5966_v15 = vcombine.low %v4481_v28, %v8331_v55  ;;  %v7489_v18 = vld [vmem:[%s7808_s27 + $0x64] sm:$0xff]   ;;  %v4506_v28 = vrot.slane %v8438_v44, 1 }
 0x136   : > { %6658 = vmatprep.mubr.msk.bf16.mxu1 %vm624_vm2, %v7467_v36  ;;  %v4079_v36 = vor.u32 %v4077_v10, %v4075_v16  ;;  %v7487_v10 = vld [vmem:[%s7808_s27 + $0x5c] sm:$0xff]  }
 0x137   : > { %6879 = vmatmul.mubr.msk.bf16.gmra.mrb[20].mxu0 %vm624_vm2, %v4036_v43  ;;  %v8538_v43 = vld [vmem:[%s7808_s27 + $0xc0] sm:$0xff]  }
 0x138   : > { %6882 = vmatprep.mubr.msk.bf16.mxu0 %vm624_vm2, %v4044_v62  ;;  %v4084_v62 = vsel %vm427_vm1, %v4079_v36, %v4083_v8 }
 0x13d   : > { %6659 = vmatmul.mubr.msk.bf16.vlgmr.msra.gmra.mrb[0].mxu1 %vm624_vm2, %v7469_v49  ;;  %v4105_v49 = vshll.u32 %v8538_v43, 16 }
 0x13e   : > { %6957 = vmatpush3.bf16.msra.mxu1 %v7791_v3  ;;  %6662 = vmatprep.mubr.msk.bf16.mxu1 %vm624_vm2, %v7471_v54  ;;  %v4071_v3 = vor.u32 %v4069_v34, %v4067_v1  ;;  %v8550_v54 = vld [vmem:[%s7808_s27 + $0xc8] sm:$0xff]   ;;  %v4109_v1 = vshrl.u32 %v8538_v43, 16 }
 0x13f   : > { %6883 = vmatmul.mubr.msk.bf16.gmra.mrb[24].mxu0 %vm624_vm2, %v4052_v50  ;;  %v4103_v50 = vor.u32 %v4101_v13, %v4099_v17  ;;  %v4107_v31 = vrot.slane %v4105_v49, 1  ;;  %v4113_v34 = vshll.u32 %v8550_v54, 16  ;;  %v4117_v47 = vshrl.u32 %v8550_v54, 16  ;;  %v7493_v17 = vld [vmem:[%s7808_s27 + $0x74] sm:$0xff]  }
 0x140   : > { %6886 = vmatprep.mubr.msk.bf16.mxu0 %vm624_vm2, %v4060_v61  ;;  %v4076_v25 = vsel %vm427_vm1, %v4071_v3, %v4075_v16  ;;  %v8556_v61 = vld [vmem:[%s7808_s27 + $0xd0] sm:$0xff]   ;;  %v4488_v13 = vrot.slane %v8344_v0, 1  ;;  %v4492_v0 = vrot.slane %v8361_v58, 1  ;;  %v4496_v58 = vrot.slane %v8381_v6, 1 }
 0x141   : > { %v4115_v3 = vrot.slane %v4113_v34, 1  ;;  %v7485_v16 = vld [vmem:[%s7808_s27 + $0x54] sm:$0xff]   ;;  %v4111_v42 = vor.u32 %v4109_v1, %v4107_v31  ;;  %v7496_v34 = vld [vmem:[%s7808_s27 + $0x8c] sm:$0xff]   ;;  %v4500_v6 = vrot.slane %v8403_v9, 1 }
 0x142   : > { %v7500_v9 = vld [vmem:[%s7808_s27 + $0xac] sm:$0xff]  }
 0x143   : > { %v4116_v8 = vsel %vm427_vm1, %v4111_v42, %v4115_v3  ;;  %v4504_v42 = vrot.slane %v8423_v63, 1  ;;  %v4508_v63 = vrot.slane %v8443_v52, 1  ;;  %v7503_v52 = vld [vmem:[%s7808_s27 + $0xc4] sm:$0xff]  }
 0x145   : > { %6663 = vmatmul.mubr.msk.bf16.gmra.mrb[4].mxu1 %vm624_vm2, %v7473_v5  ;;  %v4108_v5 = vsel %vm427_vm1, %v4103_v50, %v4107_v31  ;;  %v7495_v31 = vld [vmem:[%s7808_s27 + $0x84] sm:$0xff]  }
 0x146   : > { %6666 = vmatprep.mubr.msk.bf16.mxu1 %vm624_vm2, %v7475_v19  ;;  %v4121_v19 = vshll.u32 %v8556_v61, 16 }
 0x147   : > { %6887 = vmatmul.mubr.msk.bf16.gmra.mrb[28].mxu0 %vm624_vm2, %v4068_v21  ;;  %v8570_v21 = vld [vmem:[%s7808_s27 + $0xd8] ss:$0 sps:$4 sm:$0x11]  }
 0x148   : > { %6890 = vmatprep.mubr.msk.bf16.mxu0 %vm624_vm2, %v4076_v25  ;;  %v4119_v25 = vor.u32 %v4117_v47, %v4115_v3  ;;  %v4123_v27 = vrot.slane %v4121_v19, 1  ;;  %v4129_v36 = vshll.u32 %v8570_v21, 16  ;;  %v7498_v47 = vld [vmem:[%s7808_s27 + $0x9c] sm:$0xff]  }
 0x14d   : > { %6667 = vmatmul.mubr.msk.bf16.gmra.mrb[8].mxu1 %vm624_vm2, %v7477_v45  ;;  %v4125_v45 = vshrl.u32 %v8556_v61, 16 }
 0x14e   : > { %6670 = vmatprep.mubr.msk.bf16.mxu1 %vm624_vm2, %v7479_v37  ;;  %v4124_v37 = vsel %vm427_vm1, %v4119_v25, %v4123_v27 }
 0x14f   : > { %6891 = vmatmul.mubr.msk.bf16.gmra.mrb[32].mxu0 %vm624_vm2, %v4084_v62  ;;  %v4127_v41 = vor.u32 %v4125_v45, %v4123_v27  ;;  %v4131_v62 = vrot.slane %v4129_v36, 1  ;;  %v7501_v27 = vld [vmem:[%s7808_s27 + $0xb4] sm:$0xff]  }
 0x150   : > { %6894 = vmatprep.mubr.msk.bf16.mxu0 %vm624_vm2, %v4092_v23  ;;  %v4487_v23 = vrot.slane %v5966_v15, 1  ;;  %v7711_v36 = vld [vmem:[%s7808_s27 + $0x74] sm:$0xff]   ;;  %v4507_v15 = vsel %vm1208_vm3, %v4504_v42, %v4506_v28 }
 0x151   : > { %v4132_v49 = vsel %vm427_vm1, %v4127_v41, %v4131_v62  ;;  %v4510_v62 = vrot.slane %v8458_v2, 1 }
 0x152   : > { %v4489_v55 = vsel %vm1208_vm3, %v4487_v23, %v4488_v13 }
 0x155   : > { %6671 = vmatmul.mubr.msk.bf16.gmra.mrb[12].mxu1 %vm624_vm2, %v7481_v56  ;;  %v4490_v56 = vrot.slane %v8356_v26, 1  ;;  %v4494_v26 = vrot.slane %v8376_v11, 1  ;;  %v4498_v11 = vrot.slane %v8398_v39, 1  ;;  %v4502_v39 = vrot.slane %v8418_v29, 1  ;;  %v7502_v29 = vld [vmem:[%s7808_s27 + $0xbc] sm:$0xff]  }
 0x156   : > { %6674 = vmatprep.mubr.msk.bf16.mxu1 %vm624_vm2, %v7483_v59 }
 0x157   : > { %6895 = vmatmul.mubr.msk.bf16.gmra.mrb[36].mxu0 %vm624_vm2, %v4100_v33  ;;  %v4491_v59 = vsel %vm1208_vm3, %v4488_v13, %v4490_v56  ;;  %v4493_v50 = vsel %vm1208_vm3, %v4490_v56, %v4492_v0  ;;  %v4495_v33 = vsel %vm1208_vm3, %v4492_v0, %v4494_v26  ;;  %v4497_v1 = vsel %vm1208_vm3, %v4494_v26, %v4496_v58  ;;  %v7713_v56 = vld [vmem:[%s7808_s27 + $0x84] sm:$0xff]   ;;  %v7714_v26 = vld [vmem:[%s7808_s27 + $0x8c] sm:$0xff]  }
 0x158   : > { %6898 = vmatprep.mubr.msk.bf16.mxu0 %vm624_vm2, %v4108_v5  ;;  %v7497_v5 = vld [vmem:[%s7808_s27 + $0x94] sm:$0xff]   ;;  %v4499_v19 = vsel %vm1208_vm3, %v4496_v58, %v4498_v11  ;;  %v4501_v3 = vsel %vm1208_vm3, %v4498_v11, %v4500_v6  ;;  %v4505_v25 = vsel %vm1208_vm3, %v4502_v39, %v4504_v42  ;;  %v2406_v13 = vshrl.u32 %v7711_v36, 16 }
 0x159   : > { %v2430_v11 = vshrl.u32 %v7714_v26, 16  ;;  %v2442_v42 = vshll.u32 %v8165_v14, 16 }
 0x15d   : > { %6675 = vmatmul.mubr.msk.bf16.gmra.mrb[16].mxu1 %vm624_vm2, %v7485_v16  ;;  %v7499_v16 = vld [vmem:[%s7808_s27 + $0xa4] sm:$0xff]  }
 0x15e   : > { %6678 = vmatprep.mubr.msk.bf16.mxu1 %vm624_vm2, %v7487_v10  ;;  %v4503_v10 = vsel %vm1208_vm3, %v4500_v6, %v4502_v39 }
 0x15f   : > { %6899 = vmatmul.mubr.msk.bf16.gmra.mrb[40].mxu0 %vm624_vm2, %v4116_v8  ;;  %v7710_v8 = vld [vmem:[%s7808_s27 + $0x6c] sm:$0xff]  }
 0x160   : > { %6902 = vmatprep.mubr.msk.bf16.mxu0 %vm624_vm2, %v4124_v37  ;;  %v2398_v45 = vshrl.u32 %v7710_v8, 16  ;;  %v2402_v37 = vshll.u32 %v7711_v36, 16 }
 0x162   : > { %v2400_v41 = vor.u32 %v2398_v45, %v8004_v24  ;;  %v2404_v44 = vrot.slane %v2402_v37, 1  ;;  %v4511_v24 = vsel %vm1208_vm3, %v4508_v63, %v4510_v62  ;;  %v2444_v45 = vrot.slane %v2442_v42, 1 }
 0x165   : > { %6679 = vmatmul.mubr.msk.bf16.gmra.mrb[20].mxu1 %vm624_vm2, %v7489_v18  ;;  %v4509_v18 = vsel %vm1208_vm3, %v4506_v28, %v4508_v63  ;;  %v2450_v63 = vshll.u32 %v8168_v53, 16  ;;  %v2458_v53 = vshll.u32 %v8178_v51, 16 }
 0x166   : > { %6682 = vmatprep.mubr.msk.bf16.mxu1 %vm624_vm2, %v7491_v7  ;;  %v7712_v7 = vld [vmem:[%s7808_s27 + $0x7c] sm:$0xff]  }
 0x167   : > { %6903 = vmatmul.mubr.msk.bf16.gmra.mrb[44].mxu0 %vm624_vm2, %v4132_v49  ;;  %v2410_v23 = vshll.u32 %v7712_v7, 16  ;;  %v4512_v49 = vrot.slane %v8463_v57, 1  ;;  %v4514_v57 = vrot.slane %v8477_v32, 1 }
 0x168   : > { %6908 = vmatprep.mubr.msk.bf16.mxu0 %vm624_vm2, %v4489_v55  ;;  %v2405_v55 = vsel %vm427_vm1, %v2400_v41, %v2404_v44  ;;  %v7716_v41 = vld [vmem:[%s7808_s27 + $0xa4] sm:$0xff]  }
 0x169   : > { %v2412_v0 = vrot.slane %v2410_v23, 1  ;;  %v4513_v2 = vsel %vm1208_vm3, %v4510_v62, %v4512_v49  ;;  %v2462_v62 = vshrl.u32 %v8178_v51, 16  ;;  %v4526_v51 = vrot.slane %v8532_v22, 1 }
 0x16d   : > { %6683 = vmatmul.mubr.msk.bf16.gmra.mrb[24].mxu1 %vm624_vm2, %v7493_v17  ;;  %v2414_v17 = vshrl.u32 %v7712_v7, 16  ;;  %v2466_v7 = vshll.u32 %v8184_v48, 16  ;;  %v2474_v48 = vshll.u32 %v8197_v4, 16 }
 0x16e   : > { %6686 = vmatprep.mubr.msk.bf16.mxu1 %vm624_vm2, %v7494_v20  ;;  %v2418_v20 = vshll.u32 %v7713_v56, 16 }
 0x16f   : > { %6909 = vmatmul.mubr.msk.bf16.vlgmr.msra.gmra.mrb[0].mxu0 %vm624_vm2, %v4491_v59  ;;  %v2408_v59 = vor.u32 %v2406_v13, %v2404_v44  ;;  %v2454_v44 = vshrl.u32 %v7716_v41, 16  ;;  %v2476_v22 = vrot.slane %v2474_v48, 1 }
 0x170   : > { %6912 = vmatprep.mubr.msk.bf16.mxu0 %vm624_vm2, %v4493_v50  ;;  %v2416_v50 = vor.u32 %v2414_v17, %v2412_v0 }
 0x171   : > { %v2413_v58 = vsel %vm427_vm1, %v2408_v59, %v2412_v0  ;;  %v2478_v59 = vshrl.u32 %v8197_v4, 16  ;;  %v4530_v4 = vrot.slane %v8550_v54, 1 }
 0x175   : > { %6687 = vmatmul.mubr.msk.bf16.gmra.mrb[28].mxu1 %vm624_vm2, %v7495_v31  ;;  %v2420_v31 = vrot.slane %v2418_v20, 1  ;;  %v7717_v20 = vld [vmem:[%s7808_s27 + $0xb4] sm:$0xff]  }
 0x176   : > { %6690 = vmatprep.mubr.msk.bf16.mxu1 %vm624_vm2, %v7496_v34  ;;  %v2426_v34 = vshll.u32 %v7714_v26, 16 }
 0x177   : > { %6913 = vmatmul.mubr.msk.bf16.gmra.mrb[4].mxu0 %vm624_vm2, %v4495_v33  ;;  %v4516_v33 = vrot.slane %v8483_v12, 1  ;;  %v4518_v12 = vrot.slane %v8495_v46, 1 }
 0x178   : > { %6916 = vmatprep.mubr.msk.bf16.mxu0 %vm624_vm2, %v4497_v1  ;;  %v2422_v1 = vshrl.u32 %v7713_v56, 16  ;;  %v4528_v56 = vrot.slane %v8538_v43, 1  ;;  %v2480_v43 = vor.u32 %v2478_v59, %v2476_v22 }
 0x179   : > { %v4517_v32 = vsel %vm1208_vm3, %v4514_v57, %v4516_v33  ;;  %v4519_v8 = vsel %vm1208_vm3, %v4516_v33, %v4518_v12 }
 0x17d   : > { %6691 = vmatmul.mubr.msk.bf16.gmra.mrb[32].mxu1 %vm624_vm2, %v7497_v5  ;;  %v2421_v5 = vsel %vm427_vm1, %v2416_v50, %v2420_v31 }
 0x17e   : > { %6694 = vmatprep.mubr.msk.bf16.mxu1 %vm624_vm2, %v7498_v47  ;;  %v7715_v47 = vld [vmem:[%s7808_s27 + $0x94] sm:$0xff]  }
 0x17f   : > { %6917 = vmatmul.mubr.msk.bf16.gmra.mrb[8].mxu0 %vm624_vm2, %v4499_v19  ;;  %v2434_v6 = vshll.u32 %v7715_v47, 16  ;;  %v4515_v19 = vsel %vm1208_vm3, %v4512_v49, %v4514_v57 }
 0x180   : > { %6920 = vmatprep.mubr.msk.bf16.mxu0 %vm624_vm2, %v4501_v3  ;;  %v2428_v3 = vrot.slane %v2426_v34, 1  ;;  %v4532_v34 = vrot.slane %v8556_v61, 1  ;;  %v4534_v61 = vrot.slane %v8570_v21, 1 }
 0x182   : > { %v2432_v39 = vor.u32 %v2430_v11, %v2428_v3  ;;  %v4531_v11 = vsel %vm1208_vm3, %v4528_v56, %v4530_v4 }
 0x185   : > { %6695 = vmatmul.mubr.msk.bf16.gmra.mrb[36].mxu1 %vm624_vm2, %v7499_v16  ;;  %v2424_v16 = vor.u32 %v2422_v1, %v2420_v31  ;;  %v4529_v31 = vsel %vm1208_vm3, %v4526_v51, %v4528_v56  ;;  %v2490_v1 = vshll.u32 %v8213_v35, 16 }
 0x186   : > { %6698 = vmatprep.mubr.msk.bf16.mxu1 %vm624_vm2, %v7500_v9  ;;  %v2436_v9 = vrot.slane %v2434_v6, 1 }
 0x187   : > { %6921 = vmatmul.mubr.msk.bf16.gmra.mrb[12].mxu0 %vm624_vm2, %v4503_v10  ;;  %v2429_v10 = vsel %vm427_vm1, %v2424_v16, %v2428_v3  ;;  %v2492_v54 = vrot.slane %v2490_v1, 1 }
 0x188   : > { %6924 = vmatprep.mubr.msk.bf16.mxu0 %vm624_vm2, %v4505_v25  ;;  %v4520_v25 = vrot.slane %v8501_v38, 1  ;;  %v2437_v28 = vsel %vm427_vm1, %v2432_v39, %v2436_v9  ;;  %v2452_v38 = vrot.slane %v2450_v63, 1 }
 0x18a   : > { %v4521_v46 = vsel %vm1208_vm3, %v4518_v12, %v4520_v25  ;;  %v2456_v49 = vor.u32 %v2454_v44, %v2452_v38  ;;  %v8758_v44 = vld [vmem:[%s9055_s2] ss:$0 sm:$0xff] }
 0x18d   : > { %6699 = vmatmul.mubr.msk.bf16.gmra.mrb[40].mxu1 %vm624_vm2, %v7501_v27  ;;  %v2438_v27 = vshrl.u32 %v7715_v47, 16  ;;  %v4533_v47 = vsel %vm1208_vm3, %v4530_v4, %v4532_v34 }
 0x18e   : > { %6702 = vmatprep.mubr.msk.bf16.mxu1 %vm624_vm2, %v7502_v29  ;;  %v2446_v29 = vshrl.u32 %v8165_v14, 16  ;;  %v4522_v14 = vrot.slane %v8514_v40, 1  ;;  %v2460_v40 = vrot.slane %v2458_v53, 1 }
 0x18f   : > { %6925 = vmatmul.mubr.msk.bf16.gmra.mrb[16].mxu0 %vm624_vm2, %v4507_v15  ;;  %v2440_v36 = vor.u32 %v2438_v27, %v2436_v9 }
 0x190   : > { %6928 = vmatprep.mubr.msk.bf16.mxu0 %vm624_vm2, %v4509_v18  ;;  %v2448_v37 = vor.u32 %v2446_v29, %v2444_v45  ;;  %v4524_v18 = vrot.slane %v8520_v60, 1  ;;  %v4523_v23 = vsel %vm1208_vm3, %v4520_v25, %v4522_v14  ;;  %v2464_v60 = vor.u32 %v2462_v62, %v2460_v40 }
 0x191   : > { %v2445_v15 = vsel %vm427_vm1, %v2440_v36, %v2444_v45  ;;  %v2461_v17 = vsel %vm427_vm1, %v2456_v49, %v2460_v40 }
 0x192   : > { %v4525_v13 = vsel %vm1208_vm3, %v4522_v14, %v4524_v18  ;;  %v4527_v50 = vsel %vm1208_vm3, %v4524_v18, %v4526_v51 }
 0x195   : > { %6703 = vmatmul.mubr.msk.bf16.gmra.mrb[44].mxu1 %vm624_vm2, %v7503_v52  ;;  %v2453_v52 = vsel %vm427_vm1, %v2448_v37, %v2452_v38 }
 0x196   : > { %6732 = vmatprep.mubr.msk.bf16.mxu1 %vm624_vm2, %v2405_v55  ;;  %v2468_v55 = vrot.slane %v2466_v7, 1 }
 0x197   : > { %6929 = vmatmul.mubr.msk.bf16.gmra.mrb[20].mxu0 %vm624_vm2, %v4511_v24  ;;  %v2470_v24 = vshrl.u32 %v7717_v20, 16 }
 0x198   : > { %6932 = vmatprep.mubr.msk.bf16.mxu0 %vm624_vm2, %v4513_v2  ;;  %v2469_v0 = vsel %vm427_vm1, %v2464_v60, %v2468_v55  ;;  %v2482_v2 = vshll.u32 %v8203_v30, 16 }
 0x199   : > { %v2472_v57 = vor.u32 %v2470_v24, %v2468_v55 }
 0x19a   : > { %v2484_v26 = vrot.slane %v2482_v2, 1 }
 0x19b   : > { %v2477_v30 = vsel %vm427_vm1, %v2472_v57, %v2476_v22 }
 0x19d   : > { %6733 = vmatmul.mubr.msk.bf16.vlgmr.msra.gmra.mrb[24].mxu1 %vm624_vm2, %v2413_v58  ;;  %v7718_v58 = vld [vmem:[%s7808_s27 + $0xc4] sm:$0xff]  }
 0x19e   : > { %6736 = vmatprep.mubr.msk.bf16.mxu1 %vm624_vm2, %v2421_v5  ;;  %v2486_v33 = vshrl.u32 %v7718_v58, 16  ;;  %v2485_v5 = vsel %vm427_vm1, %v2480_v43, %v2484_v26 }
 0x19f   : > { %6933 = vmatmul.mubr.msk.bf16.gmra.mrb[24].mxu0 %vm624_vm2, %v4515_v19  ;;  %v4535_v19 = vsel %vm1208_vm3, %v4532_v34, %v4534_v61 }
 0x1a0   : > { %6936 = vmatprep.mubr.msk.bf16.mxu0 %vm624_vm2, %v4517_v32  ;;  %v2488_v6 = vor.u32 %v2486_v33, %v2484_v26 }
 0x1a2   : > { %v2493_v35 = vsel %vm427_vm1, %v2488_v6, %v2492_v54 }
 0x1a5   : > { %6737 = vmatmul.mubr.msk.bf16.gmra.mrb[28].mxu1 %vm624_vm2, %v2429_v10 }
 0x1a6   : > { %6740 = vmatprep.mubr.msk.bf16.mxu1 %vm624_vm2, %v2437_v28 }
 0x1a7   : > { %6937 = vmatmul.mubr.msk.bf16.gmra.mrb[28].mxu0 %vm624_vm2, %v4519_v8 }
 0x1a8   : > { %6940 = vmatprep.mubr.msk.bf16.mxu0 %vm624_vm2, %v4521_v46 }
 0x1ad   : > { %6741 = vmatmul.mubr.msk.bf16.gmra.mrb[32].mxu1 %vm624_vm2, %v2445_v15 }
 0x1ae   : > { %6744 = vmatprep.mubr.msk.bf16.mxu1 %vm624_vm2, %v2453_v52 }
 0x1af   : > { %6941 = vmatmul.mubr.msk.bf16.gmra.mrb[32].mxu0 %vm624_vm2, %v4523_v23 }
 0x1b0   : > { %6944 = vmatprep.mubr.msk.bf16.mxu0 %vm624_vm2, %v4525_v13 }
 0x1b5   : > { %6745 = vmatmul.mubr.msk.bf16.gmra.mrb[36].mxu1 %vm624_vm2, %v2461_v17 }
 0x1b6   : > { %6748 = vmatprep.mubr.msk.bf16.mxu1 %vm624_vm2, %v2469_v0 }
 0x1b7   : > { %6945 = vmatmul.mubr.msk.bf16.gmra.mrb[36].mxu0 %vm624_vm2, %v4527_v50 }
 0x1b8   : > { %6948 = vmatprep.mubr.msk.bf16.mxu0 %vm624_vm2, %v4529_v31 }
 0x1bd   : > { %6749 = vmatmul.mubr.msk.bf16.gmra.mrb[40].mxu1 %vm624_vm2, %v2477_v30 }
 0x1be   : > { %6752 = vmatprep.mubr.msk.bf16.mxu1 %vm624_vm2, %v2485_v5 }
 0x1bf   : > { %6949 = vmatmul.mubr.msk.bf16.gmra.mrb[40].mxu0 %vm624_vm2, %v4531_v11 }
 0x1c0   : > { %6952 = vmatprep.mubr.msk.bf16.mxu0 %vm624_vm2, %v4533_v47 }
 0x1c5   : > { %6753 = vmatmul.mubr.msk.bf16.gmra.mrb[44].mxu1 %vm624_vm2, %v2493_v35 }
 0x1c7   : > { %6953 = vmatmul.mubr.msk.bf16.gmra.mrb[44].mxu0 %vm624_vm2, %v4535_v19 }
 0x210   : > { %v6660_v3 = vpop.f32.mrb[0].mxu1 }
 0x211   : > { %v1885_v32 = vpop.f32.mrb[1].mxu1 }
 0x212   : > { %v6661_v16 = vpop.f32.mrb[2].mxu1 }
 0x213   : > { %v1888_v39 = vpop.f32.mrb[3].mxu1 }
 0x218   : > { %v6664_v9 = vpop.f32.mrb[4].mxu1 }
 0x219   : > { %v1901_v12 = vpop.f32.mrb[5].mxu1 }
 0x21a   : > { %v6665_v42 = vpop.f32.mrb[6].mxu1 }
 0x21b   : > { %v1904_v10 = vpop.f32.mrb[7].mxu1 }
 0x220   : > { %v6668_v25 = vpop.f32.mrb[8].mxu1 }
 0x221   : > { %v1917_v27 = vpop.f32.mrb[9].mxu1 }
 0x222   : > { %v8727_v28 = vpop.f32.mrb[10].mxu1 }
 0x223   : > { %v8729_v21 = vpop.f32.mrb[11].mxu1 }
 0x228   : > { %v8731_v29 = vpop.f32.mrb[12].mxu1 }
 0x229   : > { %v8733_v63 = vpop.f32.mrb[13].mxu1 }
 0x22a   : > { %v8735_v8 = vpop.f32.mrb[14].mxu1 }
 0x22b   : > { %v8737_v45 = vpop.f32.mrb[15].mxu1 }
 0x230   : > { %v8739_v46 = vpop.f32.mrb[16].mxu1 }
 0x231   : > { %v8741_v36 = vpop.f32.mrb[17].mxu1 }
 0x232   : > { %v8743_v37 = vpop.f32.mrb[18].mxu1 }
 0x233   : > { %v8745_v38 = vpop.f32.mrb[19].mxu1 }
 0x238   : > { %v8747_v14 = vpop.f32.mrb[20].mxu1 }
 0x239   : > { %v8749_v53 = vpop.f32.mrb[21].mxu1 }
 0x23a   : > { %v8751_v15 = vpop.f32.mrb[22].mxu1 }
 0x23b   : > { %v8753_v18 = vpop.f32.mrb[23].mxu1 }
 0x242   : > { %v6910_v41 = vpop.f32.mrb[0].mxu0 }
 0x243   : > { %v6958_v52 = vadd.f32 %v6910_v41, %v6660_v3  ;;  %v4645_v62 = vpop.f32.mrb[1].mxu0 }
 0x244   : > { %v6959_v7 = vadd.f32 %v4645_v62, %v1885_v32  ;;  %v6911_v23 = vpop.f32.mrb[2].mxu0 }
 0x245   : > { %v8761_v40 = vadd.f32 %v6958_v52, %v8758_v44  ;;  %v6960_v13 = vadd.f32 %v6911_v23, %v6661_v16  ;;  %v4648_v49 = vpop.f32.mrb[3].mxu0 }
 0x246   : > { %v8764_v60 = vadd.f32 %v6959_v7, %v8758_v44  ;;  %v6961_v55 = vadd.f32 %v4648_v49, %v1888_v39 }
 0x247   : > { %v5994_v51 = vmul.f32 -1.442695, %v8761_v40  ;;  %v8768_v48 = vadd.f32 %v6960_v13, %v8758_v44 }
 0x248   : > { %v5992_v17 = vmul.f32 -1.442695, %v8764_v60  ;;  %v8772_v56 = vadd.f32 %v6961_v55, %v8758_v44 }
 0x249   : > { %7504 = vpow2.f32 %v5994_v51  ;;  %v5995_v20 = vmul.f32 -1.442695, %v8768_v48 }
 0x24a   : > { %7506 = vpow2.f32 %v5992_v17  ;;  %v5993_v24 = vmul.f32 -1.442695, %v8772_v56  ;;  %v6914_v0 = vpop.f32.mrb[4].mxu0 }
 0x24b   : > { %7508 = vpow2.f32 %v5995_v20  ;;  %v6962_v59 = vadd.f32 %v6914_v0, %v6664_v9  ;;  %v4661_v2 = vpop.f32.mrb[5].mxu0 }
 0x24c   : > { %7510 = vpow2.f32 %v5993_v24  ;;  %v6963_v50 = vadd.f32 %v4661_v2, %v1901_v12  ;;  %v6915_v22 = vpop.f32.mrb[6].mxu0 }
 0x24d   : > { %v8777_v31 = vadd.f32 %v6962_v59, %v8758_v44  ;;  %v6964_v57 = vadd.f32 %v6915_v22, %v6665_v42  ;;  %v4664_v43 = vpop.f32.mrb[7].mxu0 }
 0x24e   : > { %v8780_v26 = vadd.f32 %v6963_v50, %v8758_v44  ;;  %v6965_v4 = vadd.f32 %v4664_v43, %v1904_v10 }
 0x24f   : > { %v5998_v30 = vmul.f32 -1.442695, %v8777_v31  ;;  %v8784_v34 = vadd.f32 %v6964_v57, %v8758_v44 }
 0x250   : > { %v5996_v58 = vmul.f32 -1.442695, %v8780_v26  ;;  %v8788_v33 = vadd.f32 %v6965_v4, %v8758_v44 }
 0x251   : > { %7512 = vpow2.f32 %v5998_v30  ;;  %v5999_v1 = vmul.f32 -1.442695, %v8784_v34 }
 0x252   : > { %7514 = vpow2.f32 %v5996_v58  ;;  %v5997_v5 = vmul.f32 -1.442695, %v8788_v33  ;;  %v6918_v11 = vpop.f32.mrb[8].mxu0 }
 0x253   : > { %v7505_v47 = vpop.eup %7504  ;;  %7516 = vpow2.f32 %v5999_v1  ;;  %v6966_v6 = vadd.f32 %v6918_v11, %v6668_v25  ;;  %v4677_v54 = vpop.f32.mrb[9].mxu0 }
 0x254   : > { %v7507_v61 = vpop.eup %7506  ;;  %v5085_v35 = vadd.f32 1.0, %v7505_v47  ;;  %7518 = vpow2.f32 %v5997_v5  ;;  %v6967_v19 = vadd.f32 %v4677_v54, %v1917_v27  ;;  %v6919_v3 = vpop.f32.mrb[10].mxu0 }
 0x255   : > { %v7509_v32 = vpop.eup %7508  ;;  %v5083_v16 = vadd.f32 1.0, %v7507_v61  ;;  %v8793_v39 = vadd.f32 %v6966_v6, %v8758_v44  ;;  %v6968_v9 = vadd.f32 %v6919_v3, %v8727_v28  ;;  %v4680_v12 = vpop.f32.mrb[11].mxu0 }
 0x256   : > { %v7511_v42 = vpop.eup %7510  ;;  %7520 = vrcp.f32 %v5085_v35  ;;  %v5086_v10 = vadd.f32 1.0, %v7509_v32  ;;  %v8797_v41 = vadd.f32 %v6967_v19, %v8758_v44  ;;  %v6969_v25 = vadd.f32 %v4680_v12, %v8729_v21 }
 0x257   : > { %7522 = vrcp.f32 %v5083_v16  ;;  %v5084_v52 = vadd.f32 1.0, %v7511_v42  ;;  %v6002_v27 = vmul.f32 -1.442695, %v8793_v39  ;;  %v8802_v62 = vadd.f32 %v6968_v9, %v8758_v44 }
 0x258   : > { %7524 = vrcp.f32 %v5086_v10  ;;  %v6000_v7 = vmul.f32 -1.442695, %v8797_v41  ;;  %v8806_v28 = vadd.f32 %v6969_v25, %v8758_v44 }
 0x259   : > { %7526 = vrcp.f32 %v5084_v52  ;;  %v6003_v23 = vmul.f32 -1.442695, %v8802_v62 }
 0x25a   : > { %7528 = vpow2.f32 %v6002_v27  ;;  %v6001_v13 = vmul.f32 -1.442695, %v8806_v28  ;;  %v6922_v21 = vpop.f32.mrb[12].mxu0 }
 0x25b   : > { %v7513_v49 = vpop.eup %7512  ;;  %7530 = vpow2.f32 %v6000_v7  ;;  %v6970_v55 = vadd.f32 %v6922_v21, %v8731_v29  ;;  %v4693_v51 = vpop.f32.mrb[13].mxu0 }
 0x25c   : > { %v7515_v17 = vpop.eup %7514  ;;  %v5089_v20 = vadd.f32 1.0, %v7513_v49  ;;  %7532 = vpow2.f32 %v6003_v23  ;;  %v6971_v24 = vadd.f32 %v4693_v51, %v8733_v63  ;;  %v6923_v0 = vpop.f32.mrb[14].mxu0 }
 0x25d   : > { %v7517_v59 = vpop.eup %7516  ;;  %v5087_v2 = vadd.f32 1.0, %v7515_v17  ;;  %7534 = vpow2.f32 %v6001_v13  ;;  %v8813_v50 = vadd.f32 %v6970_v55, %v8758_v44  ;;  %v6972_v22 = vadd.f32 %v6923_v0, %v8735_v8  ;;  %v4696_v57 = vpop.f32.mrb[15].mxu0 }
 0x25e   : > { %v7519_v43 = vpop.eup %7518  ;;  %7536 = vrcp.f32 %v5089_v20  ;;  %v5090_v29 = vadd.f32 1.0, %v7517_v59  ;;  %v8817_v4 = vadd.f32 %v6971_v24, %v8758_v44  ;;  %v6973_v30 = vadd.f32 %v4696_v57, %v8737_v45 }
 0x25f   : > { %7538 = vrcp.f32 %v5087_v2  ;;  %v5088_v63 = vadd.f32 1.0, %v7519_v43  ;;  %v6006_v58 = vmul.f32 -1.442695, %v8813_v50  ;;  %v8822_v1 = vadd.f32 %v6972_v22, %v8758_v44 }
 0x260   : > { %v7521_v5 = vpop.eup %7520  ;;  %7540 = vrcp.f32 %v5090_v29  ;;  %v6004_v8 = vmul.f32 -1.442695, %v8817_v4  ;;  %v8827_v11 = vadd.f32 %v6973_v30, %v8758_v44 }
 0x261   : > { %v7523_v47 = vpop.eup %7522  ;;  %7542 = vrcp.f32 %v5088_v63  ;;  %v6007_v6 = vmul.f32 -1.442695, %v8822_v1  ;;  %v5229_v19 = vmul.f32 %v7521_v5, %v8761_v40 }
 0x262   : > { %v7525_v45 = vpop.eup %7524  ;;  %7544 = vpow2.f32 %v6006_v58  ;;  %v6005_v54 = vmul.f32 -1.442695, %v8827_v11  ;;  %v6926_v61 = vpop.f32.mrb[16].mxu0  ;;  %v5227_v12 = vmul.f32 %v7523_v47, %v8764_v60 }
 0x263   : > { %v7527_v35 = vpop.eup %7526  ;;  %v5230_v3 = vmul.f32 %v7525_v45, %v8768_v48  ;;  %7546 = vpow2.f32 %v6004_v8  ;;  %v6974_v32 = vadd.f32 %v6926_v61, %v8739_v46  ;;  %v4709_v16 = vpop.f32.mrb[17].mxu0 }
 0x264   : > { %v7529_v9 = vpop.eup %7528  ;;  %v5228_v42 = vmul.f32 %v7527_v35, %v8772_v56  ;;  %7548 = vpow2.f32 %v6007_v6  ;;  %v6975_v40 = vadd.f32 %v4709_v16, %v8741_v36  ;;  %v6927_v10 = vpop.f32.mrb[18].mxu0 }
 0x265   : > { %v7531_v48 = vpop.eup %7530  ;;  %v6146_v25 = vpack.c.bf16 %v5230_v3, %v5229_v19  ;;  %v5093_v52 = vadd.f32 1.0, %v7529_v9  ;;  %7550 = vpow2.f32 %v6005_v54  ;;  %v8843_v46 = vadd.f32 %v6974_v32, %v8758_v44  ;;  %v4712_v60 = vpop.f32.mrb[19].mxu0 }
 0x266   : > { %v7533_v27 = vpop.eup %7532  ;;  %v6141_v7 = vpack.c.bf16 %v5228_v42, %v5227_v12  ;;  %v5091_v23 = vadd.f32 1.0, %v7531_v48  ;;  %v8846_v13 = vadd.f32 %v6975_v40, %v8758_v44  ;;  %v6976_v56 = vadd.f32 %v6927_v10, %v8743_v37 }
 0x267   : > { %v7535_v21 = vpop.eup %7534  ;;  %6258 = vst [vmem:[%s8838_s21 + $0x8] sm:$0xff] %v6146_v25   ;;  %7552 = vrcp.f32 %v5093_v52  ;;  %v5094_v36 = vadd.f32 1.0, %v7533_v27  ;;  %v6010_v49 = vmul.f32 -1.442695, %v8843_v46  ;;  %v6977_v55 = vadd.f32 %v4712_v60, %v8745_v38 }
 0x268   : > { %v7537_v51 = vpop.eup %7536  ;;  %6142 = vst [vmem:[%s8838_s21] sm:$0xff] %v6141_v7   ;;  %7554 = vrcp.f32 %v5091_v23  ;;  %v5092_v17 = vadd.f32 1.0, %v7535_v21  ;;  %v6008_v20 = vmul.f32 -1.442695, %v8846_v13  ;;  %v8855_v24 = vadd.f32 %v6976_v56, %v8758_v44 }
 0x269   : > { %v7539_v0 = vpop.eup %7538  ;;  %7556 = vrcp.f32 %v5094_v36  ;;  %v8858_v37 = vadd.f32 %v6977_v55, %v8758_v44  ;;  %v5233_v2 = vmul.f32 %v7537_v51, %v8777_v31 }
 0x26a   : > { %v7541_v59 = vpop.eup %7540  ;;  %7558 = vrcp.f32 %v5092_v17  ;;  %v6011_v38 = vmul.f32 -1.442695, %v8855_v24  ;;  %v6930_v22 = vpop.f32.mrb[20].mxu0  ;;  %v5231_v5 = vmul.f32 %v7539_v0, %v8780_v26 }
 0x26b   : > { %v7543_v57 = vpop.eup %7542  ;;  %v5234_v43 = vmul.f32 %v7541_v59, %v8784_v34  ;;  %7560 = vpow2.f32 %v6010_v49  ;;  %v6009_v29 = vmul.f32 -1.442695, %v8858_v37  ;;  %v6978_v30 = vadd.f32 %v6930_v22, %v8747_v14  ;;  %v4725_v63 = vpop.f32.mrb[21].mxu0 }
 0x26c   : > { %v7545_v58 = vpop.eup %7544  ;;  %v5232_v8 = vmul.f32 %v7543_v57, %v8788_v33  ;;  %7562 = vpow2.f32 %v6008_v20  ;;  %v6979_v31 = vadd.f32 %v4725_v63, %v8749_v53  ;;  %v6931_v47 = vpop.f32.mrb[22].mxu0 }
 0x26d   : > { %v7547_v6 = vpop.eup %7546  ;;  %v6156_v45 = vpack.c.bf16 %v5234_v43, %v5233_v2  ;;  %v5097_v54 = vadd.f32 1.0, %v7545_v58  ;;  %7564 = vpow2.f32 %v6011_v38  ;;  %v8869_v34 = vadd.f32 %v6978_v30, %v8758_v44  ;;  %v4728_v14 = vpop.f32.mrb[23].mxu0 }
 0x26e   : > { %v7549_v61 = vpop.eup %7548  ;;  %v6151_v35 = vpack.c.bf16 %v5232_v8, %v5231_v5  ;;  %v5095_v19 = vadd.f32 1.0, %v7547_v6  ;;  %7566 = vpow2.f32 %v6009_v29  ;;  %v8872_v26 = vadd.f32 %v6979_v31, %v8758_v44 }
 0x26f   : > { %v7551_v33 = vpop.eup %7550  ;;  %6260 = vst [vmem:[%s8838_s21 + $0x18] sm:$0xff] %v6156_v45   ;;  %7568 = vrcp.f32 %v5097_v54  ;;  %v5098_v53 = vadd.f32 1.0, %v7549_v61  ;;  %v6014_v3 = vmul.f32 -1.442695, %v8869_v34  ;;  %v6980_v32 = vadd.f32 %v6931_v47, %v8751_v15 }
 0x270   : > { %v6734_v16 = vpop.f32.mrb[24].mxu1  ;;  %6259 = vst [vmem:[%s8838_s21 + $0x10] sm:$0xff] %v6151_v35   ;;  %7570 = vrcp.f32 %v5095_v19  ;;  %v5096_v9 = vadd.f32 1.0, %v7551_v33  ;;  %v6012_v12 = vmul.f32 -1.442695, %v8872_v26  ;;  %v6981_v42 = vadd.f32 %v4728_v14, %v8753_v18 }
 0x271   : > { %v2699_v40 = vpop.f32.mrb[25].mxu1  ;;  %v7553_v10 = vpop.eup %7552  ;;  %7572 = vrcp.f32 %v5098_v53  ;;  %v8881_v48 = vadd.f32 %v6980_v32, %v8758_v44 }
 0x272   : > { %v6735_v25 = vpop.f32.mrb[26].mxu1  ;;  %v7555_v52 = vpop.eup %7554  ;;  %v5237_v60 = vmul.f32 %v7553_v10, %v8793_v39  ;;  %7574 = vrcp.f32 %v5096_v9  ;;  %v8885_v15 = vadd.f32 %v6981_v42, %v8758_v44 }
 0x273   : > { %v6934_v27 = vpop.f32.mrb[24].mxu0  ;;  %v2702_v7 = vpop.f32.mrb[27].mxu1  ;;  %v5235_v56 = vmul.f32 %v7555_v52, %v8797_v41  ;;  %7576 = vpow2.f32 %v6014_v3  ;;  %v6015_v18 = vmul.f32 -1.442695, %v8881_v48 }
 0x274   : > { %v7557_v23 = vpop.eup %7556  ;;  %v6982_v21 = vadd.f32 %v6934_v27, %v6734_v16  ;;  %v4741_v36 = vpop.f32.mrb[25].mxu0  ;;  %7578 = vpow2.f32 %v6012_v12  ;;  %v6013_v39 = vmul.f32 -1.442695, %v8885_v15 }
 0x275   : > { %v7559_v49 = vpop.eup %7558  ;;  %v5238_v55 = vmul.f32 %v7557_v23, %v8802_v62  ;;  %v6983_v51 = vadd.f32 %v4741_v36, %v2699_v40  ;;  %v6935_v17 = vpop.f32.mrb[26].mxu0  ;;  %7580 = vpow2.f32 %v6015_v18 }
 0x276   : > { %v7561_v20 = vpop.eup %7560  ;;  %v5236_v0 = vmul.f32 %v7559_v49, %v8806_v28  ;;  %v8893_v41 = vadd.f32 %v6982_v21, %v8758_v44  ;;  %v6984_v59 = vadd.f32 %v6935_v17, %v6735_v25  ;;  %v4744_v2 = vpop.f32.mrb[27].mxu0  ;;  %7582 = vpow2.f32 %v6013_v39 }
 0x277   : > { %v7563_v38 = vpop.eup %7562  ;;  %v6166_v22 = vpack.c.bf16 %v5238_v55, %v5237_v60  ;;  %v5101_v57 = vadd.f32 1.0, %v7561_v20  ;;  %v8896_v62 = vadd.f32 %v6983_v51, %v8758_v44  ;;  %v6985_v31 = vadd.f32 %v4744_v2, %v2702_v7 }
 0x278   : > { %v7565_v43 = vpop.eup %7564  ;;  %v6161_v29 = vpack.c.bf16 %v5236_v0, %v5235_v56  ;;  %v5099_v30 = vadd.f32 1.0, %v7563_v38  ;;  %v8899_v28 = vadd.f32 %v6984_v59, %v8758_v44  ;;  %v6738_v63 = vpop.f32.mrb[28].mxu1  ;;  %v6018_v8 = vmul.f32 -1.442695, %v8893_v41 }
 0x279   : > { %v7567_v58 = vpop.eup %7566  ;;  %6262 = vst [vmem:[%s8838_s21 + $0x28] sm:$0xff] %v6166_v22   ;;  %7584 = vrcp.f32 %v5101_v57  ;;  %v5102_v5 = vadd.f32 1.0, %v7565_v43  ;;  %v2715_v47 = vpop.f32.mrb[29].mxu1  ;;  %v6016_v54 = vmul.f32 -1.442695, %v8896_v62  ;;  %v8907_v19 = vadd.f32 %v6985_v31, %v8758_v44 }
 0x27a   : > { %v7569_v6 = vpop.eup %7568  ;;  %6261 = vst [vmem:[%s8838_s21 + $0x20] sm:$0xff] %v6161_v29   ;;  %7586 = vrcp.f32 %v5099_v30  ;;  %v5100_v45 = vadd.f32 1.0, %v7567_v58  ;;  %v6739_v14 = vpop.f32.mrb[30].mxu1  ;;  %v6019_v35 = vmul.f32 -1.442695, %v8899_v28 }
 0x27b   : > { %v7571_v61 = vpop.eup %7570  ;;  %7588 = vrcp.f32 %v5102_v5  ;;  %v6938_v33 = vpop.f32.mrb[28].mxu0  ;;  %v5241_v32 = vmul.f32 %v7569_v6, %v8813_v50  ;;  %v6017_v10 = vmul.f32 -1.442695, %v8907_v19 }
 0x27c   : > { %v2718_v53 = vpop.f32.mrb[31].mxu1  ;;  %v7573_v3 = vpop.eup %7572  ;;  %v5239_v16 = vmul.f32 %v7571_v61, %v8817_v4  ;;  %7590 = vrcp.f32 %v5100_v45  ;;  %v6986_v9 = vadd.f32 %v6938_v33, %v6738_v63 }
 0x27d   : > { %v4757_v12 = vpop.f32.mrb[29].mxu0  ;;  %v7575_v42 = vpop.eup %7574  ;;  %v5242_v40 = vmul.f32 %v7573_v3, %v8822_v1  ;;  %7592 = vpow2.f32 %v6018_v8 }
 0x27e   : > { %v6987_v25 = vadd.f32 %v4757_v12, %v2715_v47  ;;  %v6939_v52 = vpop.f32.mrb[30].mxu0  ;;  %v7577_v60 = vpop.eup %7576  ;;  %v5240_v27 = vmul.f32 %v7575_v42, %v8827_v11  ;;  %7594 = vpow2.f32 %v6016_v54  ;;  %v8915_v50 = vadd.f32 %v6986_v9, %v8758_v44 }
 0x27f   : > { %v6988_v4 = vadd.f32 %v6939_v52, %v6739_v14  ;;  %v4760_v7 = vpop.f32.mrb[31].mxu0  ;;  %v7579_v23 = vpop.eup %7578  ;;  %v6176_v56 = vpack.c.bf16 %v5242_v40, %v5241_v32  ;;  %v5105_v18 = vadd.f32 1.0, %v7577_v60  ;;  %7596 = vpow2.f32 %v6019_v35 }
 0x280   : > { %v8918_v1 = vadd.f32 %v6987_v25, %v8758_v44  ;;  %v7581_v21 = vpop.eup %7580  ;;  %v6171_v36 = vpack.c.bf16 %v5240_v27, %v5239_v16  ;;  %v5103_v49 = vadd.f32 1.0, %v7579_v23  ;;  %7598 = vpow2.f32 %v6017_v10  ;;  %v6742_v11 = vpop.f32.mrb[32].mxu1 }
 0x281   : > { %v7583_v55 = vpop.eup %7582  ;;  %6264 = vst [vmem:[%s8838_s21 + $0x38] sm:$0xff] %v6176_v56   ;;  %7600 = vrcp.f32 %v5105_v18  ;;  %v5106_v39 = vadd.f32 1.0, %v7581_v21  ;;  %v6022_v51 = vmul.f32 -1.442695, %v8915_v50  ;;  %v8923_v17 = vadd.f32 %v6988_v4, %v8758_v44  ;;  %v2731_v20 = vpop.f32.mrb[33].mxu1 }
 0x282   : > { %6263 = vst [vmem:[%s8838_s21 + $0x30] sm:$0xff] %v6171_v36   ;;  %7602 = vrcp.f32 %v5103_v49  ;;  %v5104_v0 = vadd.f32 1.0, %v7583_v55  ;;  %v6020_v59 = vmul.f32 -1.442695, %v8918_v1  ;;  %v6989_v2 = vadd.f32 %v4760_v7, %v2718_v53  ;;  %v6743_v38 = vpop.f32.mrb[34].mxu1  ;;  %v6942_v43 = vpop.f32.mrb[32].mxu0 }
 0x283   : > { %v7585_v22 = vpop.eup %7584  ;;  %7604 = vrcp.f32 %v5106_v39  ;;  %v6023_v57 = vmul.f32 -1.442695, %v8923_v17  ;;  %v2734_v29 = vpop.f32.mrb[35].mxu1  ;;  %v6990_v58 = vadd.f32 %v6942_v43, %v6742_v11 }
 0x284   : > { %v7587_v30 = vpop.eup %7586  ;;  %7606 = vrcp.f32 %v5104_v0  ;;  %v8929_v63 = vadd.f32 %v6989_v2, %v8758_v44  ;;  %v4773_v5 = vpop.f32.mrb[33].mxu0  ;;  %v5245_v31 = vmul.f32 %v7585_v22, %v8843_v46 }
 0x285   : > { %v7589_v8 = vpop.eup %7588  ;;  %v5243_v47 = vmul.f32 %v7587_v30, %v8846_v13  ;;  %7608 = vpow2.f32 %v6022_v51  ;;  %v6991_v6 = vadd.f32 %v4773_v5, %v2731_v20  ;;  %v6943_v45 = vpop.f32.mrb[34].mxu0  ;;  %v8936_v35 = vadd.f32 %v6990_v58, %v8758_v44 }
 0x286   : > { %v7591_v54 = vpop.eup %7590  ;;  %v5246_v14 = vmul.f32 %v7589_v8, %v8855_v24  ;;  %7610 = vpow2.f32 %v6020_v59  ;;  %v6021_v61 = vmul.f32 -1.442695, %v8929_v63  ;;  %v4776_v33 = vpop.f32.mrb[35].mxu0  ;;  %v6992_v13 = vadd.f32 %v6943_v45, %v6743_v38 }
 0x287   : > { %v7593_v53 = vpop.eup %7592  ;;  %v5244_v3 = vmul.f32 %v7591_v54, %v8858_v37  ;;  %7612 = vpow2.f32 %v6023_v57  ;;  %v8940_v46 = vadd.f32 %v6991_v6, %v8758_v44  ;;  %v6026_v60 = vmul.f32 -1.442695, %v8936_v35 }
 0x288   : > { %v7595_v32 = vpop.eup %7594  ;;  %v6186_v16 = vpack.c.bf16 %v5246_v14, %v5245_v31  ;;  %v5109_v9 = vadd.f32 1.0, %v7593_v53  ;;  %7614 = vpow2.f32 %v6021_v61  ;;  %v6746_v24 = vpop.f32.mrb[36].mxu1  ;;  %v8943_v10 = vadd.f32 %v6992_v13, %v8758_v44 }
 0x289   : > { %v7597_v12 = vpop.eup %7596  ;;  %v6181_v42 = vpack.c.bf16 %v5244_v3, %v5243_v47  ;;  %v5107_v40 = vadd.f32 1.0, %v7595_v32  ;;  %v2747_v25 = vpop.f32.mrb[37].mxu1  ;;  %v6993_v27 = vadd.f32 %v4776_v33, %v2734_v29  ;;  %v6024_v56 = vmul.f32 -1.442695, %v8940_v46 }
 0x28a   : > { %v7599_v52 = vpop.eup %7598  ;;  %6266 = vst [vmem:[%s8838_s21 + $0x48] sm:$0xff] %v6186_v16   ;;  %7616 = vrcp.f32 %v5109_v9  ;;  %v5110_v37 = vadd.f32 1.0, %v7597_v12  ;;  %v6747_v4 = vpop.f32.mrb[38].mxu1  ;;  %v6027_v49 = vmul.f32 -1.442695, %v8943_v10 }
 0x28b   : > { %v7601_v7 = vpop.eup %7600  ;;  %6265 = vst [vmem:[%s8838_s21 + $0x40] sm:$0xff] %v6181_v42   ;;  %7618 = vrcp.f32 %v5107_v40  ;;  %v5108_v23 = vadd.f32 1.0, %v7599_v52  ;;  %v6946_v18 = vpop.f32.mrb[36].mxu0  ;;  %v8951_v11 = vadd.f32 %v6993_v27, %v8758_v44 }
 0x28c   : > { %v2750_v21 = vpop.f32.mrb[39].mxu1  ;;  %v7603_v36 = vpop.eup %7602  ;;  %7620 = vrcp.f32 %v5110_v37  ;;  %v6994_v55 = vadd.f32 %v6946_v18, %v6746_v24  ;;  %v5249_v20 = vmul.f32 %v7601_v7, %v8869_v34 }
 0x28d   : > { %v4789_v39 = vpop.f32.mrb[37].mxu0  ;;  %v7605_v51 = vpop.eup %7604  ;;  %v5247_v0 = vmul.f32 %v7603_v36, %v8872_v26  ;;  %7622 = vrcp.f32 %v5108_v23  ;;  %v6025_v57 = vmul.f32 -1.442695, %v8951_v11 }
 0x28e   : > { %v6995_v59 = vadd.f32 %v4789_v39, %v2747_v25  ;;  %v6947_v2 = vpop.f32.mrb[38].mxu0  ;;  %v7607_v38 = vpop.eup %7606  ;;  %v5250_v22 = vmul.f32 %v7605_v51, %v8881_v48  ;;  %7624 = vpow2.f32 %v6026_v60  ;;  %v8958_v43 = vadd.f32 %v6994_v55, %v8758_v44 }
 0x28f   : > { %v4792_v29 = vpop.f32.mrb[39].mxu0  ;;  %v7609_v30 = vpop.eup %7608  ;;  %v5248_v58 = vmul.f32 %v7607_v38, %v8885_v15  ;;  %7626 = vpow2.f32 %v6024_v56  ;;  %v6996_v26 = vadd.f32 %v6947_v2, %v6747_v4 }
 0x290   : > { %v8962_v34 = vadd.f32 %v6995_v59, %v8758_v44  ;;  %v7611_v5 = vpop.eup %7610  ;;  %v6196_v8 = vpack.c.bf16 %v5250_v22, %v5249_v20  ;;  %v5113_v31 = vadd.f32 1.0, %v7609_v30  ;;  %7628 = vpow2.f32 %v6027_v49  ;;  %v6750_v48 = vpop.f32.mrb[40].mxu1 }
 0x291   : > { %v7613_v47 = vpop.eup %7612  ;;  %v6191_v6 = vpack.c.bf16 %v5248_v58, %v5247_v0  ;;  %v5111_v45 = vadd.f32 1.0, %v7611_v5  ;;  %7630 = vpow2.f32 %v6025_v57  ;;  %v6030_v54 = vmul.f32 -1.442695, %v8958_v43  ;;  %v2763_v14 = vpop.f32.mrb[41].mxu1 }
 0x292   : > { %v7615_v15 = vpop.eup %7614  ;;  %6268 = vst [vmem:[%s8838_s21 + $0x58] sm:$0xff] %v6196_v8   ;;  %7632 = vrcp.f32 %v5113_v31  ;;  %v5114_v61 = vadd.f32 1.0, %v7613_v47  ;;  %v8967_v33 = vadd.f32 %v6996_v26, %v8758_v44  ;;  %v6997_v53 = vadd.f32 %v4792_v29, %v2750_v21  ;;  %v6751_v3 = vpop.f32.mrb[42].mxu1 }
 0x293   : > { %6267 = vst [vmem:[%s8838_s21 + $0x50] sm:$0xff] %v6191_v6   ;;  %7634 = vrcp.f32 %v5111_v45  ;;  %v5112_v13 = vadd.f32 1.0, %v7615_v15  ;;  %v6028_v32 = vmul.f32 -1.442695, %v8962_v34  ;;  %v6950_v16 = vpop.f32.mrb[40].mxu0  ;;  %v2766_v9 = vpop.f32.mrb[43].mxu1 }
 0x294   : > { %v7617_v24 = vpop.eup %7616  ;;  %7636 = vrcp.f32 %v5114_v61  ;;  %v6031_v12 = vmul.f32 -1.442695, %v8967_v33  ;;  %v8973_v42 = vadd.f32 %v6997_v53, %v8758_v44  ;;  %v6998_v40 = vadd.f32 %v6950_v16, %v6750_v48  ;;  %v4805_v25 = vpop.f32.mrb[41].mxu0 }
 0x295   : > { %v7619_v52 = vpop.eup %7618  ;;  %v5253_v37 = vmul.f32 %v7617_v24, %v8893_v41  ;;  %7638 = vrcp.f32 %v5112_v13  ;;  %v6999_v60 = vadd.f32 %v4805_v25, %v2763_v14  ;;  %v6951_v27 = vpop.f32.mrb[42].mxu0 }
 0x296   : > { %v7621_v4 = vpop.eup %7620  ;;  %v5251_v7 = vmul.f32 %v7619_v52, %v8896_v62  ;;  %7640 = vpow2.f32 %v6030_v54  ;;  %v6029_v23 = vmul.f32 -1.442695, %v8973_v42  ;;  %v8979_v56 = vadd.f32 %v6998_v40, %v8758_v44  ;;  %v4808_v18 = vpop.f32.mrb[43].mxu0 }
 0x297   : > { %v7623_v21 = vpop.eup %7622  ;;  %v5254_v36 = vmul.f32 %v7621_v4, %v8899_v28  ;;  %7642 = vpow2.f32 %v6028_v32  ;;  %v8983_v49 = vadd.f32 %v6999_v60, %v8758_v44  ;;  %v7000_v41 = vadd.f32 %v6951_v27, %v6751_v3 }
 0x298   : > { %v7625_v55 = vpop.eup %7624  ;;  %v5252_v39 = vmul.f32 %v7623_v21, %v8907_v19  ;;  %7644 = vpow2.f32 %v6031_v12  ;;  %v6034_v62 = vmul.f32 -1.442695, %v8979_v56  ;;  %v7001_v51 = vadd.f32 %v4808_v18, %v2766_v9  ;;  %v6754_v20 = vpop.f32.mrb[44].mxu1 }
 0x299   : > { %v7627_v0 = vpop.eup %7626  ;;  %v6206_v59 = vpack.c.bf16 %v5254_v36, %v5253_v37  ;;  %v5117_v2 = vadd.f32 1.0, %v7625_v55  ;;  %7646 = vpow2.f32 %v6029_v23  ;;  %v2779_v38 = vpop.f32.mrb[45].mxu1  ;;  %v8988_v29 = vadd.f32 %v7000_v41, %v8758_v44 }
 0x29a   : > { %v7629_v28 = vpop.eup %7628  ;;  %v6201_v22 = vpack.c.bf16 %v5252_v39, %v5251_v7  ;;  %v5115_v57 = vadd.f32 1.0, %v7627_v0  ;;  %7648 = vpow2.f32 %v6034_v62  ;;  %v6755_v19 = vpop.f32.mrb[46].mxu1  ;;  %v6032_v26 = vmul.f32 -1.442695, %v8983_v49 }
 0x29b   : > { %v7631_v30 = vpop.eup %7630  ;;  %6270 = vst [vmem:[%s8838_s21 + $0x68] sm:$0xff] %v6206_v59   ;;  %7650 = vrcp.f32 %v5117_v2  ;;  %v5118_v58 = vadd.f32 1.0, %v7629_v28  ;;  %v8993_v5 = vadd.f32 %v7001_v51, %v8758_v44  ;;  %v6954_v8 = vpop.f32.mrb[44].mxu0  ;;  %v6035_v6 = vmul.f32 -1.442695, %v8988_v29 }
 0x29c   : > { %v2782_v31 = vpop.f32.mrb[47].mxu1  ;;  %v7633_v48 = vpop.eup %7632  ;;  %6269 = vst [vmem:[%s8838_s21 + $0x60] sm:$0xff] %v6201_v22   ;;  %7652 = vrcp.f32 %v5115_v57  ;;  %v5116_v47 = vadd.f32 1.0, %v7631_v30  ;;  %v7002_v45 = vadd.f32 %v6954_v8, %v6754_v20 }
 0x29d   : > { %v4821_v54 = vpop.f32.mrb[45].mxu0  ;;  %v7635_v14 = vpop.eup %7634  ;;  %7654 = vrcp.f32 %v5118_v58  ;;  %v6033_v15 = vmul.f32 -1.442695, %v8993_v5  ;;  %v5257_v13 = vmul.f32 %v7633_v48, %v8915_v50 }
 0x29e   : > { %v7003_v61 = vadd.f32 %v4821_v54, %v2779_v38  ;;  %v6955_v53 = vpop.f32.mrb[46].mxu0  ;;  %v7637_v3 = vpop.eup %7636  ;;  %7656 = vrcp.f32 %v5116_v47  ;;  %v9000_v32 = vadd.f32 %v7002_v45, %v8758_v44  ;;  %v5255_v12 = vmul.f32 %v7635_v14, %v8918_v1 }
 0x29f   : > { %v7004_v16 = vadd.f32 %v6955_v53, %v6755_v19  ;;  %v4824_v9 = vpop.f32.mrb[47].mxu0  ;;  %v7639_v24 = vpop.eup %7638  ;;  %v5258_v40 = vmul.f32 %v7637_v3, %v8923_v17  ;;  %7658 = vpow2.f32 %v6032_v26 }
 0x2a0   : > { %v7005_v25 = vadd.f32 %v4824_v9, %v2782_v31  ;;  %v7641_v52 = vpop.eup %7640  ;;  %v5256_v37 = vmul.f32 %v7639_v24, %v8929_v63  ;;  %7660 = vpow2.f32 %v6035_v6  ;;  %v6038_v50 = vmul.f32 -1.442695, %v9000_v32 }
 0x2a1   : > { %v9007_v60 = vadd.f32 %v7003_v61, %v8758_v44  ;;  %v7643_v27 = vpop.eup %7642  ;;  %v6216_v4 = vpack.c.bf16 %v5258_v40, %v5257_v13  ;;  %v5121_v7 = vadd.f32 1.0, %v7641_v52  ;;  %7662 = vpow2.f32 %v6033_v15 }
 0x2a2   : > { %v9010_v1 = vadd.f32 %v7004_v16, %v8758_v44  ;;  %v7645_v17 = vpop.eup %7644  ;;  %v6211_v23 = vpack.c.bf16 %v5256_v37, %v5255_v12  ;;  %v5119_v18 = vadd.f32 1.0, %v7643_v27  ;;  %7664 = vpow2.f32 %v6038_v50 }
 0x2a3   : > { %v7647_v21 = vpop.eup %7646  ;;  %6272 = vst [vmem:[%s8838_s21 + $0x78] sm:$0xff] %v6216_v4   ;;  %7666 = vrcp.f32 %v5121_v7  ;;  %v5122_v63 = vadd.f32 1.0, %v7645_v17  ;;  %v9014_v36 = vadd.f32 %v7005_v25, %v8758_v44  ;;  %v6036_v39 = vmul.f32 -1.442695, %v9007_v60 }
 0x2a4   : > { %v7649_v41 = vpop.eup %7648  ;;  %6271 = vst [vmem:[%s8838_s21 + $0x70] sm:$0xff] %v6211_v23   ;;  %7668 = vrcp.f32 %v5119_v18  ;;  %v5120_v55 = vadd.f32 1.0, %v7647_v21  ;;  %v6039_v51 = vmul.f32 -1.442695, %v9010_v1 }
 0x2a5   : > { %v7651_v62 = vpop.eup %7650  ;;  %7670 = vrcp.f32 %v5122_v63  ;;  %v6037_v0 = vmul.f32 -1.442695, %v9014_v36  ;;  %v5125_v2 = vadd.f32 1.0, %v7649_v41 }
 0x2a6   : > { %v7653_v20 = vpop.eup %7652  ;;  %7672 = vrcp.f32 %v5120_v55  ;;  %v5261_v44 = vmul.f32 %v7651_v62, %v8936_v35 }
 0x2a7   : > { %v7655_v59 = vpop.eup %7654  ;;  %7674 = vpow2.f32 %v6036_v39  ;;  %v5259_v57 = vmul.f32 %v7653_v20, %v8940_v46 }
 0x2a8   : > { %v7657_v38 = vpop.eup %7656  ;;  %v5262_v28 = vmul.f32 %v7655_v59, %v8943_v10  ;;  %7676 = vpow2.f32 %v6039_v51 }
 0x2a9   : > { %v7659_v22 = vpop.eup %7658  ;;  %v5260_v19 = vmul.f32 %v7657_v38, %v8951_v11  ;;  %7678 = vpow2.f32 %v6037_v0 }
 0x2aa   : > { %v7661_v30 = vpop.eup %7660  ;;  %v6226_v58 = vpack.c.bf16 %v5262_v28, %v5261_v44  ;;  %v5123_v26 = vadd.f32 1.0, %v7659_v22  ;;  %7680 = vrcp.f32 %v5125_v2 }
 0x2ab   : > { %v7663_v8 = vpop.eup %7662  ;;  %v6221_v31 = vpack.c.bf16 %v5260_v19, %v5259_v57  ;;  %v5126_v48 = vadd.f32 1.0, %v7661_v30 }
 0x2ac   : > { %v7665_v35 = vpop.eup %7664  ;;  %6274 = vst [vmem:[%s8838_s21 + $0x88] sm:$0xff] %v6226_v58   ;;  %7682 = vrcp.f32 %v5123_v26  ;;  %v5124_v10 = vadd.f32 1.0, %v7663_v8 }
 0x2ad   : > { %v7667_v47 = vpop.eup %7666  ;;  %6273 = vst [vmem:[%s8838_s21 + $0x80] sm:$0xff] %v6221_v31   ;;  %7684 = vrcp.f32 %v5126_v48  ;;  %v5129_v14 = vadd.f32 1.0, %v7665_v35 }
 0x2ae   : > { %v7669_v46 = vpop.eup %7668  ;;  %7686 = vrcp.f32 %v5124_v10  ;;  %v5265_v45 = vmul.f32 %v7667_v47, %v8958_v43 }
 0x2af   : > { %v7671_v11 = vpop.eup %7670  ;;  %v5263_v15 = vmul.f32 %v7669_v46, %v8962_v34  ;;  %7688 = vrcp.f32 %v5129_v14 }
 0x2b0   : > { %v7673_v6 = vpop.eup %7672  ;;  %v5266_v54 = vmul.f32 %v7671_v11, %v8967_v33 }
 0x2b1   : > { %v5264_v61 = vmul.f32 %v7673_v6, %v8973_v42  ;;  %v7675_v53 = vpop.eup %7674 }
 0x2b2   : > { %v6236_v3 = vpack.c.bf16 %v5266_v54, %v5265_v45  ;;  %v7677_v13 = vpop.eup %7676  ;;  %v5127_v9 = vadd.f32 1.0, %v7675_v53 }
 0x2b3   : > { %v6231_v16 = vpack.c.bf16 %v5264_v61, %v5263_v15  ;;  %v7679_v24 = vpop.eup %7678  ;;  %v5130_v12 = vadd.f32 1.0, %v7677_v13 }
 0x2b4   : > { %6276 = vst [vmem:[%s8838_s21 + $0x98] sm:$0xff] %v6236_v3   ;;  %v7681_v40 = vpop.eup %7680  ;;  %7690 = vrcp.f32 %v5127_v9  ;;  %v5128_v43 = vadd.f32 1.0, %v7679_v24 }
 0x2b5   : > { %6275 = vst [vmem:[%s8838_s21 + $0x90] sm:$0xff] %v6231_v16   ;;  %7692 = vrcp.f32 %v5130_v12  ;;  %v5269_v25 = vmul.f32 %v7681_v40, %v8979_v56 }
 0x2b6   : > { %v7683_v33 = vpop.eup %7682  ;;  %7694 = vrcp.f32 %v5128_v43 }
 0x2b7   : > { %v7685_v34 = vpop.eup %7684  ;;  %v5267_v37 = vmul.f32 %v7683_v33, %v8983_v49 }
 0x2b8   : > { %v7687_v42 = vpop.eup %7686  ;;  %v5270_v52 = vmul.f32 %v7685_v34, %v8988_v29 }
 0x2b9   : > { %v5268_v50 = vmul.f32 %v7687_v42, %v8993_v5  ;;  %v7689_v7 = vpop.eup %7688 }
 0x2ba   : > { %v6246_v27 = vpack.c.bf16 %v5270_v52, %v5269_v25  ;;  %v5273_v21 = vmul.f32 %v7689_v7, %v9000_v32 }
 0x2bb   : > { %v6241_v4 = vpack.c.bf16 %v5268_v50, %v5267_v37 }
 0x2bc   : > { %6278 = vst [vmem:[%s8838_s21 + $0xa8] sm:$0xff] %v6246_v27  }
 0x2bd   : > { %6277 = vst [vmem:[%s8838_s21 + $0xa0] sm:$0xff] %v6241_v4  }
 0x2be   : > { %v7691_v17 = vpop.eup %7690 }
 0x2bf   : > { %v7693_v23 = vpop.eup %7692  ;;  %v5271_v29 = vmul.f32 %v7691_v17, %v9007_v60 }
 0x2c0   : > { %v7695_v18 = vpop.eup %7694  ;;  %v5274_v56 = vmul.f32 %v7693_v23, %v9010_v1 }
 0x2c1   : > { %v5272_v49 = vmul.f32 %v7695_v18, %v9014_v36 }
 0x2c2   : > { %v6256_v63 = vpack.c.bf16 %v5274_v56, %v5273_v21 }
 0x2c3   : > { %v6251_v41 = vpack.c.bf16 %v5272_v49, %v5271_v29 }
 0x2c4   : > { %6280 = vst [vmem:[%s8838_s21 + $0xb8] sm:$0xff] %v6256_v63  }
 0x2c5   : > { %6279 = vst [vmem:[%s8838_s21 + $0xb0] sm:$0xff] %v6251_v41  }
 0x2c6 PF: > { %s13_s14 = sadd.s32 1, %s7741_s14   ;;  %s9057_s12 = smov %s7737_s13 }
 0x2c7   : > { %p10_p5 = scmp.ge.s32.totalorder %s13_s14, 4   ;;  %s9058_s13 = smov %s9060_s15 }
 0x2c9   :  { %12 = sbr.rel (!%p10_p5) target bundleno = 2 (0x2), region = 76 }

</bundles_post_ra>
